<compile_context>
chip_gen: v6e
topology: v6e:2x2x1
jax: 0.10.0
libtpu: 0.0.40
codegen_flags: <defaults>
</compile_context>

<pallas_src>
import functools

import jax
import jax.numpy as jnp
import numpy as np
from jax import lax
from jax.experimental import pallas as pl
from jax.experimental.pallas import tpu as pltpu


# ----------------------------- glue: pixel (un)shuffle ------------------------------

def pixel_unshuffle(x, r):
    # NCHW (N, C, H, W) -> (N, C*r*r, H//r, W//r), matching torch.nn.PixelUnshuffle.
    n, c, h, w = x.shape
    x = x.reshape(n, c, h // r, r, w // r, r)
    x = jnp.transpose(x, (0, 1, 3, 5, 2, 4))
    return x.reshape(n, c * r * r, h // r, w // r)


def pixel_shuffle(x, r):
    # NCHW (N, C*r*r, H, W) -> (N, C, H*r, W*r), matching torch.nn.PixelShuffle.
    n, crr, h, w = x.shape
    c = crr // (r * r)
    x = x.reshape(n, c, r, r, h, w)
    x = jnp.transpose(x, (0, 1, 4, 2, 5, 3))
    return x.reshape(n, c, h * r, w * r)


def _activation_fn(activation):
    if activation is None:
        return None
    if callable(activation):
        return activation
    table = {"relu": jax.nn.relu, "gelu": jax.nn.gelu,
             "tanh": jnp.tanh, "sigmoid": jax.nn.sigmoid}
    return table[activation]


# ----------------------------------- Pallas kernel ----------------------------------

def _rescale_conv_kernel(x_ref, w_ref, b_ref, o_ref, xpad_ref, *, ksize, pad, act):
    """Direct k*k-tap stride-1 conv for one batch tile.

    x_ref    : (Bt, H, W, Cin)      NHWC input tile (compute dtype)
    w_ref    : (k*k, Cout, Cin)     per-tap weights, tap t = kh*k + kw (compute dtype)
    b_ref    : (Cout, 1)            f32 bias column
    o_ref    : (Bt, Cout, Ho*Wo)    lane-dense output (NCHW with flattened spatial)
    xpad_ref : (Hp, Wp, Cin) VMEM   zero-halo'd input scratch, reused across the batch tile
    """
    bt, h, w, cin = x_ref.shape
    _, cout, m = o_ref.shape
    ho = h + 2 * pad - ksize + 1
    wo = w + 2 * pad - ksize + 1
    hp, wp = h + 2 * pad, w + 2 * pad
    cdt = xpad_ref.dtype

    # Zero ONLY the halo ring (perf review): top/bottom `pad` rows, left/right `pad`
    # columns.  The interior is fully overwritten below and the ring never receives
    # non-zero data, but the scratch is uninitialized and per-core, so the (cheap) ring
    # zero runs every grid step to stay correct under megacore sharding.
    if pad > 0:
        xpad_ref[0:pad, :, :] = jnp.zeros((pad, wp, cin), cdt)
        xpad_ref[pad + h:hp, :, :] = jnp.zeros((pad, wp, cin), cdt)
        xpad_ref[pad:pad + h, 0:pad, :] = jnp.zeros((h, pad, cin), cdt)
        xpad_ref[pad:pad + h, pad + w:wp, :] = jnp.zeros((h, pad, cin), cdt)

    for b in range(bt):                       # static unroll; Bt is small
        # Fused zero padding: interior copy into the halo'd VMEM tile
        # (no host jnp.pad, no extra HBM round trip of the activations).
        xpad_ref[pad:pad + h, pad:pad + w, :] = x_ref[b]

        # k*k shifted taps accumulated straight from xpad into an f32 accumulator
        # (perf review: no im2col staging -> no masked lane-offset column stores; the
        #  padded input is written once and read k*k times — loads, not stores).
        acc = jnp.zeros((cout, m), jnp.float32)
        for kh in range(ksize):               # small static kernel -> fully unrolled
            for kw in range(ksize):
                # (Ho, Wo, Cin) -> (Ho*Wo, Cin): sublane merge only (layout no-op when
                # Wo is a multiple of 8); lane dim (Cin) untouched.
                patch = xpad_ref[kh:kh + ho, kw:kw + wo, :].reshape(ho * wo, cin)
                w_tap = w_ref[kh * ksize + kw]                       # (Cout, Cin)
                acc = acc + lax.dot_general(
                    w_tap, patch,
                    dimension_numbers=(((1,), (1,)), ((), ())),       # contract Cin
                    preferred_element_type=jnp.float32)               # (Cout, M) f32

        acc = acc + b_ref[...]                                        # (Cout, 1) broadcast
        if act is not None:
            acc = act(acc)                                            # fused, on f32
        o_ref[b] = acc.astype(o_ref.dtype)                            # lane-dense store


# ------------------------------------ host wrappers ----------------------------------

def _vmem_limit_bytes():
    """Generation-aware scoped-VMEM limit (perf review): ~80% of physical VMEM
    (~102 MiB on v5e/v6e's 128 MiB, ~51 MiB on v7x's 64 MiB), conservative fallback."""
    try:
        info = pltpu.get_tpu_info()
        cap = int(getattr(info, "vmem_capacity_bytes", 0))
        if cap > 0:
            return int(min(max(cap * 4 // 5, 32 * 1024 * 1024), 112 * 1024 * 1024))
    except Exception:
        pass
    return 48 * 1024 * 1024      # fits v7x's 64 MiB physical VMEM


def _pick_batch_tile(n, per_batch_bytes, budget_bytes, cap=8):
    """Pack several batch elements per grid step when per-step work is tiny (perf
    review): amortizes the ~0.35 us per-grid-step overhead.  Largest divisor of n whose
    double-buffered footprint fits the budget (capped)."""
    bt = 1
    for cand in range(1, min(n, cap) + 1):
        if n % cand == 0 and cand * per_batch_bytes <= budget_bytes:
            bt = cand
    return bt


def conv2d_pallas(x_nhwc, w_taps, bias, ksize, padding, activation=None,
                  compute_dtype=None, out_dtype=None):
    """2D conv (stride 1) via k*k shifted-tap MXU dots, one batch tile per grid step.

    x_nhwc : (N, H, W, Cin), UNPADDED (the halo is built inside the kernel)
    w_taps : (k*k, Cout, Cin), tap index t = kh*k + kw
    bias   : (Cout,)
    Returns NCHW (N, Cout, Ho, Wo).

    compute_dtype: storage/MXU dtype for x and weights (f32 accumulation regardless).
    bf16 is recommended on all generations (halves HBM/VMEM traffic); elementwise math
    (bias, activation) always stays on the f32 accumulator (v5e VPU/EUP have no bf16).
    """
    n, h, w, cin = x_nhwc.shape
    kk, cout, cin_w = w_taps.shape
    assert kk == ksize * ksize and cin_w == cin
    ho = h + 2 * padding - ksize + 1
    wo = w + 2 * padding - ksize + 1
    m = ho * wo
    hp, wp = h + 2 * padding, w + 2 * padding

    out_dtype = x_nhwc.dtype if out_dtype is None else out_dtype
    cdt = x_nhwc.dtype if compute_dtype is None else compute_dtype
    x_c = x_nhwc.astype(cdt)
    w_c = w_taps.astype(cdt)
    b2 = bias.reshape(cout, 1).astype(jnp.float32)   # bias/act always on f32 accumulator

    vmem_limit = _vmem_limit_bytes()
    per_batch_bytes = 2 * (h * w * cin * x_c.dtype.itemsize            # double-buffered in
                           + cout * m * jnp.dtype(out_dtype).itemsize)  # double-buffered out
    bt = _pick_batch_tile(n, per_batch_bytes, vmem_limit // 4)
    grid = (n // bt,)

    kernel = functools.partial(_rescale_conv_kernel, ksize=ksize, pad=padding,
                               act=_activation_fn(activation))
    y = pl.pallas_call(
        kernel,
        out_shape=jax.ShapeDtypeStruct((n, cout, m), out_dtype),
        grid_spec=pltpu.PrefetchScalarGridSpec(
            num_scalar_prefetch=0,
            grid=grid,                                   # batch-tile axis (megacore-friendly)
            in_specs=[
                pl.BlockSpec((bt, h, w, cin), lambda g: (g, 0, 0, 0)),
                pl.BlockSpec((kk, cout, cin), lambda g: (0, 0, 0)),   # resident weights
                pl.BlockSpec((cout, 1), lambda g: (0, 0)),            # resident bias
            ],
            out_specs=pl.BlockSpec((bt, cout, m), lambda g: (g, 0, 0)),
            scratch_shapes=[
                pltpu.VMEM((hp, wp, cin), cdt),          # zero-halo'd input tile
            ],
        ),
        compiler_params=pltpu.CompilerParams(
            dimension_semantics=("parallel",),
            vmem_limit_bytes=vmem_limit,
        ),
    )(x_c, w_c, b2)
    # (N, Cout, Ho*Wo) -> NCHW: metadata-only reshape, no extra HBM copy.
    return y.reshape(n, cout, ho, wo)


# -------------------------------- RescaleConv forward -------------------------------

def rescale_conv_forward(x_nchw, weight, bias, factor, kernel_size=3, padding=1,
                         activation=None, transpose=False, compute_dtype=None,
                         stride=1, output_padding=0):
    """Matches RescaleConv.forward.

    non-transpose: weight is Conv2d weight (Cout=C, Cin=C*r^2, k, k), bias (C,)
    transpose:     weight is ConvTranspose2d weight (Cin=C, Cout=C*r^2, k, k), bias (C*r^2,)
    """
    k = kernel_size
    assert stride == 1 and output_padding == 0, \
        "kernel assumes the module defaults: stride=1, output_padding=0"
    if not transpose:
        # PixelUnshuffle fused with the NCHW->NHWC layout change: one XLA copy total.
        n, c, h, w = x_nchw.shape
        r = factor
        xu_nhwc = (x_nchw.reshape(n, c, h // r, r, w // r, r)
                   .transpose(0, 2, 4, 1, 3, 5)
                   .reshape(n, h // r, w // r, c * r * r))
        # Conv2d weight OIHW (Cout, Cin, k, k) -> per-tap (k*k, Cout, Cin).
        w_taps = jnp.transpose(weight, (2, 3, 0, 1)).reshape(
            k * k, weight.shape[0], weight.shape[1])
        return conv2d_pallas(xu_nhwc, w_taps, bias, k, padding,
                             activation=activation, compute_dtype=compute_dtype,
                             out_dtype=x_nchw.dtype)                  # NCHW (N, C, H/r, W/r)
    else:
        # ConvTranspose2d(stride=1, output_padding=0) == Conv2d with a spatially flipped
        # kernel, in/out channels swapped, and padding k-1-p.
        pad_eq = k - 1 - padding
        assert pad_eq >= 0, "ConvTranspose2d equivalence assumes padding <= kernel_size-1"
        w_flip = jnp.flip(weight, axis=(2, 3))                        # (Cin, Cout, k, k)
        w_taps = jnp.transpose(w_flip, (2, 3, 1, 0)).reshape(
            k * k, weight.shape[1], weight.shape[0])
        x_nhwc = jnp.transpose(x_nchw, (0, 2, 3, 1))
        # activation is elementwise, so fusing it before PixelShuffle is equivalent to
        # applying it after (the module applies it after the shuffle).
        y = conv2d_pallas(x_nhwc, w_taps, bias, k, pad_eq,
                          activation=activation, compute_dtype=compute_dtype,
                          out_dtype=x_nchw.dtype)                     # NCHW (N, C*r^2, H, W)
        return pixel_shuffle(y, factor)                               # (N, C, H*r, W*r)


# --------------------------------- pure-JAX references ------------------------------

def _ref_nontranspose(x, weight, bias, factor, padding):
    xu = pixel_unshuffle(x, factor)
    y = jax.lax.conv_general_dilated(
        xu, weight, window_strides=(1, 1),
        padding=[(padding, padding), (padding, padding)],
        dimension_numbers=("NCHW", "OIHW", "NCHW"))
    return y + bias[None, :, None, None]


def _ref_transpose(x, weight, bias, factor, padding, activation):
    # Direct ConvTranspose2d(stride=1) reference by output scatter-accumulation.
    n, cin, h, w = x.shape
    k = weight.shape[2]
    cout = weight.shape[1]
    full = jnp.zeros((n, cout, h + k - 1, w + k - 1), jnp.float32)
    for kh in range(k):
        for kw in range(k):
            contrib = jnp.einsum("nihw,io->nohw", x, weight[:, :, kh, kw])
            full = full.at[:, :, kh:kh + h, kw:kw + w].add(contrib)
    y = full[:, :, padding:padding + h + k - 1 - 2 * padding,
             padding:padding + w + k - 1 - 2 * padding]
    y = y + bias[None, :, None, None]
    y = pixel_shuffle(y, factor)
    act = _activation_fn(activation)
    return act(y) if act is not None else y


# ----------------------------------------- main --------------------------------------

if __name__ == "__main__":
    factor, channels, ksize, pad = 2, 4, 3, 1
    N, H, W = 2, 16, 16
    cin_big = channels * factor ** 2

    key = jax.random.PRNGKey(0)
    k1, k2, k3, k4, k5 = jax.random.split(key, 5)
    x = jax.random.normal(k1, (N, channels, H, W), jnp.float32)

    # ---- mode 1: transpose=False (PixelUnshuffle -> Conv2d), no activation ----
    w_fwd = 0.1 * jax.random.normal(k2, (channels, cin_big, ksize, ksize), jnp.float32)
    b_fwd = 0.1 * jax.random.normal(k3, (channels,), jnp.float32)
    y = rescale_conv_forward(x, w_fwd, b_fwd, factor, ksize, pad,
                             activation=None, transpose=False)
    jax.block_until_ready(y)
    y_ref = _ref_nontranspose(x, w_fwd, b_fwd, factor, pad)
    assert y.shape == (N, channels, H // factor, W // factor), y.shape
    assert np.allclose(np.asarray(y), np.asarray(y_ref), atol=1e-4, rtol=1e-4)

    # ---- mode 1 with bf16 storage/MXU (f32 accumulate & writeback); loose tolerance ----
    y_bf = rescale_conv_forward(x, w_fwd, b_fwd, factor, ksize, pad,
                                activation=None, transpose=False,
                                compute_dtype=jnp.bfloat16)
    jax.block_until_ready(y_bf)
    assert np.allclose(np.asarray(y_bf), np.asarray(y_ref), atol=5e-2, rtol=5e-2)

    # ---- mode 2: transpose=True (ConvTranspose2d -> PixelShuffle), relu activation ----
    w_t = 0.1 * jax.random.normal(k4, (channels, cin_big, ksize, ksize), jnp.float32)
    b_t = 0.1 * jax.random.normal(k5, (cin_big,), jnp.float32)
    yt = rescale_conv_forward(x, w_t, b_t, factor, ksize, pad,
                              activation="relu", transpose=True)
    jax.block_until_ready(yt)
    yt_ref = _ref_transpose(x, w_t, b_t, factor, pad, "relu")
    assert yt.shape == (N, channels, H * factor, W * factor), yt.shape
    assert np.allclose(np.asarray(yt), np.asarray(yt_ref), atol=1e-4, rtol=1e-4)

    print("KERNEL_OK")
</pallas_src>

<mosaic_0001>
module attributes {stable_mosaic.version = 11 : i64} {
  func.func @_rescale_conv_kernel(%arg0: i32, %arg1: memref<2x8x8x16xf32, #tpu.memory_space<vmem>>, %arg2: memref<9x4x16xf32, #tpu.memory_space<vmem>>, %arg3: memref<4x1xf32, #tpu.memory_space<vmem>>, %arg4: memref<2x4x64xf32, #tpu.memory_space<vmem>>, %arg5: memref<10x10x16xf32, #tpu.memory_space<vmem>>) attributes {dimension_semantics = [#tpu.dimension_semantics<parallel>], iteration_bounds = array<i64: 1>, scalar_prefetch = 0 : i64, scratch_operands = 1 : i64, tpu.core_type = #tpu.core_type<tc>, window_params = [{transform_indices = @transform_0, window_bounds = array<i64: 2, 8, 8, 16>}, {pipeline_mode = #tpu.pipeline_mode<synchronous>, transform_indices = @transform_1, window_bounds = array<i64: 9, 4, 16>}, {pipeline_mode = #tpu.pipeline_mode<synchronous>, transform_indices = @transform_2, window_bounds = array<i64: 4, 1>}, {transform_indices = @transform_3, window_bounds = array<i64: 2, 4, 64>}]} {
    %cst = arith.constant 0.000000e+00 : f32
    %0 = vector.broadcast %cst : f32 to vector<1x10x16xf32>
    %c0 = arith.constant 0 : index
    %c0_0 = arith.constant 0 : index
    %c0_1 = arith.constant 0 : index
    %1 = vector.load %arg5[%c0, %c0_0, %c0_1] : memref<10x10x16xf32, #tpu.memory_space<vmem>>, vector<1x10x16xf32>
    tpu.vector_store %arg5[%c0, %c0_0, %c0_1], %0 {strides = array<i32>} : memref<10x10x16xf32, #tpu.memory_space<vmem>>, vector<1x10x16xf32>,
    %cst_2 = arith.constant 0.000000e+00 : f32
    %2 = vector.broadcast %cst_2 : f32 to vector<1x10x16xf32>
    %c9 = arith.constant 9 : index
    %c0_3 = arith.constant 0 : index
    %c0_4 = arith.constant 0 : index
    %3 = vector.load %arg5[%c9, %c0_3, %c0_4] : memref<10x10x16xf32, #tpu.memory_space<vmem>>, vector<1x10x16xf32>
    tpu.vector_store %arg5[%c9, %c0_3, %c0_4], %2 {strides = array<i32>} : memref<10x10x16xf32, #tpu.memory_space<vmem>>, vector<1x10x16xf32>,
    %cst_5 = arith.constant 0.000000e+00 : f32
    %4 = vector.broadcast %cst_5 : f32 to vector<8x1x16xf32>
    %c1 = arith.constant 1 : index
    %c0_6 = arith.constant 0 : index
    %c0_7 = arith.constant 0 : index
    %5 = vector.load %arg5[%c1, %c0_6, %c0_7] : memref<10x10x16xf32, #tpu.memory_space<vmem>>, vector<8x1x16xf32>
    tpu.vector_store %arg5[%c1, %c0_6, %c0_7], %4 {strides = array<i32>} : memref<10x10x16xf32, #tpu.memory_space<vmem>>, vector<8x1x16xf32>,
    %cst_8 = arith.constant 0.000000e+00 : f32
    %6 = vector.broadcast %cst_8 : f32 to vector<8x1x16xf32>
    %c1_9 = arith.constant 1 : index
    %c9_10 = arith.constant 9 : index
    %c0_11 = arith.constant 0 : index
    %7 = vector.load %arg5[%c1_9, %c9_10, %c0_11] : memref<10x10x16xf32, #tpu.memory_space<vmem>>, vector<8x1x16xf32>
    tpu.vector_store %arg5[%c1_9, %c9_10, %c0_11], %6 {strides = array<i32>} : memref<10x10x16xf32, #tpu.memory_space<vmem>>, vector<8x1x16xf32>,
    %c0_12 = arith.constant 0 : index
    %c0_13 = arith.constant 0 : index
    %c0_14 = arith.constant 0 : index
    %c0_15 = arith.constant 0 : index
    %8 = vector.load %arg1[%c0_12, %c0_13, %c0_14, %c0_15] : memref<2x8x8x16xf32, #tpu.memory_space<vmem>>, vector<1x8x8x16xf32>
    %9 = vector.shape_cast %8 : vector<1x8x8x16xf32> to vector<8x8x16xf32>
    %c1_16 = arith.constant 1 : index
    %c1_17 = arith.constant 1 : index
    %c0_18 = arith.constant 0 : index
    %10 = vector.load %arg5[%c1_16, %c1_17, %c0_18] : memref<10x10x16xf32, #tpu.memory_space<vmem>>, vector<8x8x16xf32>
    tpu.vector_store %arg5[%c1_16, %c1_17, %c0_18], %9 {strides = array<i32>} : memref<10x10x16xf32, #tpu.memory_space<vmem>>, vector<8x8x16xf32>,
    %cst_19 = arith.constant 0.000000e+00 : f32
    %11 = vector.broadcast %cst_19 : f32 to vector<4x64xf32>
    %c0_20 = arith.constant 0 : index
    %c0_21 = arith.constant 0 : index
    %c0_22 = arith.constant 0 : index
    %12 = vector.load %arg5[%c0_20, %c0_21, %c0_22] : memref<10x10x16xf32, #tpu.memory_space<vmem>>, vector<8x8x16xf32>
    %13 = vector.shape_cast %12 : vector<8x8x16xf32> to vector<64x16xf32>
    %c0_23 = arith.constant 0 : index
    %c0_24 = arith.constant 0 : index
    %c0_25 = arith.constant 0 : index
    %14 = vector.load %arg2[%c0_23, %c0_24, %c0_25] : memref<9x4x16xf32, #tpu.memory_space<vmem>>, vector<1x4x16xf32>
    %15 = vector.shape_cast %14 : vector<1x4x16xf32> to vector<4x16xf32>
    %cst_26 = arith.constant dense<0.000000e+00> : vector<4x64xf32>
    %16 = tpu.matmul %15, %13, %cst_26 {dimension_numbers = #tpu.dot_dimension_numbers<[1], [1], [0], [0], [0, 0, 1, 0], [], []>} : vector<4x16xf32>, vector<64x16xf32>, vector<4x64xf32> -> vector<4x64xf32>
    %17 = arith.addf %11, %16 : vector<4x64xf32>
    %c0_27 = arith.constant 0 : index
    %c1_28 = arith.constant 1 : index
    %c0_29 = arith.constant 0 : index
    %18 = vector.load %arg5[%c0_27, %c1_28, %c0_29] : memref<10x10x16xf32, #tpu.memory_space<vmem>>, vector<8x8x16xf32>
    %19 = vector.shape_cast %18 : vector<8x8x16xf32> to vector<64x16xf32>
    %c1_30 = arith.constant 1 : index
    %c0_31 = arith.constant 0 : index
    %c0_32 = arith.constant 0 : index
    %20 = vector.load %arg2[%c1_30, %c0_31, %c0_32] : memref<9x4x16xf32, #tpu.memory_space<vmem>>, vector<1x4x16xf32>
    %21 = vector.shape_cast %20 : vector<1x4x16xf32> to vector<4x16xf32>
    %cst_33 = arith.constant dense<0.000000e+00> : vector<4x64xf32>
    %22 = tpu.matmul %21, %19, %cst_33 {dimension_numbers = #tpu.dot_dimension_numbers<[1], [1], [0], [0], [0, 0, 1, 0], [], []>} : vector<4x16xf32>, vector<64x16xf32>, vector<4x64xf32> -> vector<4x64xf32>
    %23 = arith.addf %17, %22 : vector<4x64xf32>
    %c0_34 = arith.constant 0 : index
    %c2 = arith.constant 2 : index
    %c0_35 = arith.constant 0 : index
    %24 = vector.load %arg5[%c0_34, %c2, %c0_35] : memref<10x10x16xf32, #tpu.memory_space<vmem>>, vector<8x8x16xf32>
    %25 = vector.shape_cast %24 : vector<8x8x16xf32> to vector<64x16xf32>
    %c2_36 = arith.constant 2 : index
    %c0_37 = arith.constant 0 : index
    %c0_38 = arith.constant 0 : index
    %26 = vector.load %arg2[%c2_36, %c0_37, %c0_38] : memref<9x4x16xf32, #tpu.memory_space<vmem>>, vector<1x4x16xf32>
    %27 = vector.shape_cast %26 : vector<1x4x16xf32> to vector<4x16xf32>
    %cst_39 = arith.constant dense<0.000000e+00> : vector<4x64xf32>
    %28 = tpu.matmul %27, %25, %cst_39 {dimension_numbers = #tpu.dot_dimension_numbers<[1], [1], [0], [0], [0, 0, 1, 0], [], []>} : vector<4x16xf32>, vector<64x16xf32>, vector<4x64xf32> -> vector<4x64xf32>
    %29 = arith.addf %23, %28 : vector<4x64xf32>
    %c1_40 = arith.constant 1 : index
    %c0_41 = arith.constant 0 : index
    %c0_42 = arith.constant 0 : index
    %30 = vector.load %arg5[%c1_40, %c0_41, %c0_42] : memref<10x10x16xf32, #tpu.memory_space<vmem>>, vector<8x8x16xf32>
    %31 = vector.shape_cast %30 : vector<8x8x16xf32> to vector<64x16xf32>
    %c3 = arith.constant 3 : index
    %c0_43 = arith.constant 0 : index
    %c0_44 = arith.constant 0 : index
    %32 = vector.load %arg2[%c3, %c0_43, %c0_44] : memref<9x4x16xf32, #tpu.memory_space<vmem>>, vector<1x4x16xf32>
    %33 = vector.shape_cast %32 : vector<1x4x16xf32> to vector<4x16xf32>
    %cst_45 = arith.constant dense<0.000000e+00> : vector<4x64xf32>
    %34 = tpu.matmul %33, %31, %cst_45 {dimension_numbers = #tpu.dot_dimension_numbers<[1], [1], [0], [0], [0, 0, 1, 0], [], []>} : vector<4x16xf32>, vector<64x16xf32>, vector<4x64xf32> -> vector<4x64xf32>
    %35 = arith.addf %29, %34 : vector<4x64xf32>
    %c1_46 = arith.constant 1 : index
    %c1_47 = arith.constant 1 : index
    %c0_48 = arith.constant 0 : index
    %36 = vector.load %arg5[%c1_46, %c1_47, %c0_48] : memref<10x10x16xf32, #tpu.memory_space<vmem>>, vector<8x8x16xf32>
    %37 = vector.shape_cast %36 : vector<8x8x16xf32> to vector<64x16xf32>
    %c4 = arith.constant 4 : index
    %c0_49 = arith.constant 0 : index
    %c0_50 = arith.constant 0 : index
    %38 = vector.load %arg2[%c4, %c0_49, %c0_50] : memref<9x4x16xf32, #tpu.memory_space<vmem>>, vector<1x4x16xf32>
    %39 = vector.shape_cast %38 : vector<1x4x16xf32> to vector<4x16xf32>
    %cst_51 = arith.constant dense<0.000000e+00> : vector<4x64xf32>
    %40 = tpu.matmul %39, %37, %cst_51 {dimension_numbers = #tpu.dot_dimension_numbers<[1], [1], [0], [0], [0, 0, 1, 0], [], []>} : vector<4x16xf32>, vector<64x16xf32>, vector<4x64xf32> -> vector<4x64xf32>
    %41 = arith.addf %35, %40 : vector<4x64xf32>
    %c1_52 = arith.constant 1 : index
    %c2_53 = arith.constant 2 : index
    %c0_54 = arith.constant 0 : index
    %42 = vector.load %arg5[%c1_52, %c2_53, %c0_54] : memref<10x10x16xf32, #tpu.memory_space<vmem>>, vector<8x8x16xf32>
    %43 = vector.shape_cast %42 : vector<8x8x16xf32> to vector<64x16xf32>
    %c5 = arith.constant 5 : index
    %c0_55 = arith.constant 0 : index
    %c0_56 = arith.constant 0 : index
    %44 = vector.load %arg2[%c5, %c0_55, %c0_56] : memref<9x4x16xf32, #tpu.memory_space<vmem>>, vector<1x4x16xf32>
    %45 = vector.shape_cast %44 : vector<1x4x16xf32> to vector<4x16xf32>
    %cst_57 = arith.constant dense<0.000000e+00> : vector<4x64xf32>
    %46 = tpu.matmul %45, %43, %cst_57 {dimension_numbers = #tpu.dot_dimension_numbers<[1], [1], [0], [0], [0, 0, 1, 0], [], []>} : vector<4x16xf32>, vector<64x16xf32>, vector<4x64xf32> -> vector<4x64xf32>
    %47 = arith.addf %41, %46 : vector<4x64xf32>
    %c2_58 = arith.constant 2 : index
    %c0_59 = arith.constant 0 : index
    %c0_60 = arith.constant 0 : index
    %48 = vector.load %arg5[%c2_58, %c0_59, %c0_60] : memref<10x10x16xf32, #tpu.memory_space<vmem>>, vector<8x8x16xf32>
    %49 = vector.shape_cast %48 : vector<8x8x16xf32> to vector<64x16xf32>
    %c6 = arith.constant 6 : index
    %c0_61 = arith.constant 0 : index
    %c0_62 = arith.constant 0 : index
    %50 = vector.load %arg2[%c6, %c0_61, %c0_62] : memref<9x4x16xf32, #tpu.memory_space<vmem>>, vector<1x4x16xf32>
    %51 = vector.shape_cast %50 : vector<1x4x16xf32> to vector<4x16xf32>
    %cst_63 = arith.constant dense<0.000000e+00> : vector<4x64xf32>
    %52 = tpu.matmul %51, %49, %cst_63 {dimension_numbers = #tpu.dot_dimension_numbers<[1], [1], [0], [0], [0, 0, 1, 0], [], []>} : vector<4x16xf32>, vector<64x16xf32>, vector<4x64xf32> -> vector<4x64xf32>
    %53 = arith.addf %47, %52 : vector<4x64xf32>
    %c2_64 = arith.constant 2 : index
    %c1_65 = arith.constant 1 : index
    %c0_66 = arith.constant 0 : index
    %54 = vector.load %arg5[%c2_64, %c1_65, %c0_66] : memref<10x10x16xf32, #tpu.memory_space<vmem>>, vector<8x8x16xf32>
    %55 = vector.shape_cast %54 : vector<8x8x16xf32> to vector<64x16xf32>
    %c7 = arith.constant 7 : index
    %c0_67 = arith.constant 0 : index
    %c0_68 = arith.constant 0 : index
    %56 = vector.load %arg2[%c7, %c0_67, %c0_68] : memref<9x4x16xf32, #tpu.memory_space<vmem>>, vector<1x4x16xf32>
    %57 = vector.shape_cast %56 : vector<1x4x16xf32> to vector<4x16xf32>
    %cst_69 = arith.constant dense<0.000000e+00> : vector<4x64xf32>
    %58 = tpu.matmul %57, %55, %cst_69 {dimension_numbers = #tpu.dot_dimension_numbers<[1], [1], [0], [0], [0, 0, 1, 0], [], []>} : vector<4x16xf32>, vector<64x16xf32>, vector<4x64xf32> -> vector<4x64xf32>
    %59 = arith.addf %53, %58 : vector<4x64xf32>
    %c2_70 = arith.constant 2 : index
    %c2_71 = arith.constant 2 : index
    %c0_72 = arith.constant 0 : index
    %60 = vector.load %arg5[%c2_70, %c2_71, %c0_72] : memref<10x10x16xf32, #tpu.memory_space<vmem>>, vector<8x8x16xf32>
    %61 = vector.shape_cast %60 : vector<8x8x16xf32> to vector<64x16xf32>
    %c8 = arith.constant 8 : index
    %c0_73 = arith.constant 0 : index
    %c0_74 = arith.constant 0 : index
    %62 = vector.load %arg2[%c8, %c0_73, %c0_74] : memref<9x4x16xf32, #tpu.memory_space<vmem>>, vector<1x4x16xf32>
    %63 = vector.shape_cast %62 : vector<1x4x16xf32> to vector<4x16xf32>
    %cst_75 = arith.constant dense<0.000000e+00> : vector<4x64xf32>
    %64 = tpu.matmul %63, %61, %cst_75 {dimension_numbers = #tpu.dot_dimension_numbers<[1], [1], [0], [0], [0, 0, 1, 0], [], []>} : vector<4x16xf32>, vector<64x16xf32>, vector<4x64xf32> -> vector<4x64xf32>
    %65 = arith.addf %59, %64 : vector<4x64xf32>
    %c0_76 = arith.constant 0 : index
    %c0_77 = arith.constant 0 : index
    %66 = vector.load %arg3[%c0_76, %c0_77] : memref<4x1xf32, #tpu.memory_space<vmem>>, vector<4x1xf32>
    %67 = vector.broadcast %66 : vector<4x1xf32> to vector<4x64xf32>
    %68 = arith.addf %65, %67 : vector<4x64xf32>
    %c0_78 = arith.constant 0 : index
    %c0_79 = arith.constant 0 : index
    %c0_80 = arith.constant 0 : index
    %69 = vector.load %arg4[%c0_78, %c0_79, %c0_80] : memref<2x4x64xf32, #tpu.memory_space<vmem>>, vector<1x4x64xf32>
    %70 = vector.shape_cast %69 : vector<1x4x64xf32> to vector<4x64xf32>
    %71 = vector.shape_cast %68 : vector<4x64xf32> to vector<1x4x64xf32>
    tpu.vector_store %arg4[%c0_78, %c0_79, %c0_80], %71 {strides = array<i32>} : memref<2x4x64xf32, #tpu.memory_space<vmem>>, vector<1x4x64xf32>,
    %c1_81 = arith.constant 1 : index
    %c0_82 = arith.constant 0 : index
    %c0_83 = arith.constant 0 : index
    %c0_84 = arith.constant 0 : index
    %72 = vector.load %arg1[%c1_81, %c0_82, %c0_83, %c0_84] : memref<2x8x8x16xf32, #tpu.memory_space<vmem>>, vector<1x8x8x16xf32>
    %73 = vector.shape_cast %72 : vector<1x8x8x16xf32> to vector<8x8x16xf32>
    %c1_85 = arith.constant 1 : index
    %c1_86 = arith.constant 1 : index
    %c0_87 = arith.constant 0 : index
    %74 = vector.load %arg5[%c1_85, %c1_86, %c0_87] : memref<10x10x16xf32, #tpu.memory_space<vmem>>, vector<8x8x16xf32>
    tpu.vector_store %arg5[%c1_85, %c1_86, %c0_87], %73 {strides = array<i32>} : memref<10x10x16xf32, #tpu.memory_space<vmem>>, vector<8x8x16xf32>,
    %cst_88 = arith.constant 0.000000e+00 : f32
    %75 = vector.broadcast %cst_88 : f32 to vector<4x64xf32>
    %c0_89 = arith.constant 0 : index
    %c0_90 = arith.constant 0 : index
    %c0_91 = arith.constant 0 : index
    %76 = vector.load %arg5[%c0_89, %c0_90, %c0_91] : memref<10x10x16xf32, #tpu.memory_space<vmem>>, vector<8x8x16xf32>
    %77 = vector.shape_cast %76 : vector<8x8x16xf32> to vector<64x16xf32>
    %c0_92 = arith.constant 0 : index
    %c0_93 = arith.constant 0 : index
    %c0_94 = arith.constant 0 : index
    %78 = vector.load %arg2[%c0_92, %c0_93, %c0_94] : memref<9x4x16xf32, #tpu.memory_space<vmem>>, vector<1x4x16xf32>
    %79 = vector.shape_cast %78 : vector<1x4x16xf32> to vector<4x16xf32>
    %cst_95 = arith.constant dense<0.000000e+00> : vector<4x64xf32>
    %80 = tpu.matmul %79, %77, %cst_95 {dimension_numbers = #tpu.dot_dimension_numbers<[1], [1], [0], [0], [0, 0, 1, 0], [], []>} : vector<4x16xf32>, vector<64x16xf32>, vector<4x64xf32> -> vector<4x64xf32>
    %81 = arith.addf %75, %80 : vector<4x64xf32>
    %c0_96 = arith.constant 0 : index
    %c1_97 = arith.constant 1 : index
    %c0_98 = arith.constant 0 : index
    %82 = vector.load %arg5[%c0_96, %c1_97, %c0_98] : memref<10x10x16xf32, #tpu.memory_space<vmem>>, vector<8x8x16xf32>
    %83 = vector.shape_cast %82 : vector<8x8x16xf32> to vector<64x16xf32>
    %c1_99 = arith.constant 1 : index
    %c0_100 = arith.constant 0 : index
    %c0_101 = arith.constant 0 : index
    %84 = vector.load %arg2[%c1_99, %c0_100, %c0_101] : memref<9x4x16xf32, #tpu.memory_space<vmem>>, vector<1x4x16xf32>
    %85 = vector.shape_cast %84 : vector<1x4x16xf32> to vector<4x16xf32>
    %cst_102 = arith.constant dense<0.000000e+00> : vector<4x64xf32>
    %86 = tpu.matmul %85, %83, %cst_102 {dimension_numbers = #tpu.dot_dimension_numbers<[1], [1], [0], [0], [0, 0, 1, 0], [], []>} : vector<4x16xf32>, vector<64x16xf32>, vector<4x64xf32> -> vector<4x64xf32>
    %87 = arith.addf %81, %86 : vector<4x64xf32>
    %c0_103 = arith.constant 0 : index
    %c2_104 = arith.constant 2 : index
    %c0_105 = arith.constant 0 : index
    %88 = vector.load %arg5[%c0_103, %c2_104, %c0_105] : memref<10x10x16xf32, #tpu.memory_space<vmem>>, vector<8x8x16xf32>
    %89 = vector.shape_cast %88 : vector<8x8x16xf32> to vector<64x16xf32>
    %c2_106 = arith.constant 2 : index
    %c0_107 = arith.constant 0 : index
    %c0_108 = arith.constant 0 : index
    %90 = vector.load %arg2[%c2_106, %c0_107, %c0_108] : memref<9x4x16xf32, #tpu.memory_space<vmem>>, vector<1x4x16xf32>
    %91 = vector.shape_cast %90 : vector<1x4x16xf32> to vector<4x16xf32>
    %cst_109 = arith.constant dense<0.000000e+00> : vector<4x64xf32>
    %92 = tpu.matmul %91, %89, %cst_109 {dimension_numbers = #tpu.dot_dimension_numbers<[1], [1], [0], [0], [0, 0, 1, 0], [], []>} : vector<4x16xf32>, vector<64x16xf32>, vector<4x64xf32> -> vector<4x64xf32>
    %93 = arith.addf %87, %92 : vector<4x64xf32>
    %c1_110 = arith.constant 1 : index
    %c0_111 = arith.constant 0 : index
    %c0_112 = arith.constant 0 : index
    %94 = vector.load %arg5[%c1_110, %c0_111, %c0_112] : memref<10x10x16xf32, #tpu.memory_space<vmem>>, vector<8x8x16xf32>
    %95 = vector.shape_cast %94 : vector<8x8x16xf32> to vector<64x16xf32>
    %c3_113 = arith.constant 3 : index
    %c0_114 = arith.constant 0 : index
    %c0_115 = arith.constant 0 : index
    %96 = vector.load %arg2[%c3_113, %c0_114, %c0_115] : memref<9x4x16xf32, #tpu.memory_space<vmem>>, vector<1x4x16xf32>
    %97 = vector.shape_cast %96 : vector<1x4x16xf32> to vector<4x16xf32>
    %cst_116 = arith.constant dense<0.000000e+00> : vector<4x64xf32>
    %98 = tpu.matmul %97, %95, %cst_116 {dimension_numbers = #tpu.dot_dimension_numbers<[1], [1], [0], [0], [0, 0, 1, 0], [], []>} : vector<4x16xf32>, vector<64x16xf32>, vector<4x64xf32> -> vector<4x64xf32>
    %99 = arith.addf %93, %98 : vector<4x64xf32>
    %c1_117 = arith.constant 1 : index
    %c1_118 = arith.constant 1 : index
    %c0_119 = arith.constant 0 : index
    %100 = vector.load %arg5[%c1_117, %c1_118, %c0_119] : memref<10x10x16xf32, #tpu.memory_space<vmem>>, vector<8x8x16xf32>
    %101 = vector.shape_cast %100 : vector<8x8x16xf32> to vector<64x16xf32>
    %c4_120 = arith.constant 4 : index
    %c0_121 = arith.constant 0 : index
    %c0_122 = arith.constant 0 : index
    %102 = vector.load %arg2[%c4_120, %c0_121, %c0_122] : memref<9x4x16xf32, #tpu.memory_space<vmem>>, vector<1x4x16xf32>
    %103 = vector.shape_cast %102 : vector<1x4x16xf32> to vector<4x16xf32>
    %cst_123 = arith.constant dense<0.000000e+00> : vector<4x64xf32>
    %104 = tpu.matmul %103, %101, %cst_123 {dimension_numbers = #tpu.dot_dimension_numbers<[1], [1], [0], [0], [0, 0, 1, 0], [], []>} : vector<4x16xf32>, vector<64x16xf32>, vector<4x64xf32> -> vector<4x64xf32>
    %105 = arith.addf %99, %104 : vector<4x64xf32>
    %c1_124 = arith.constant 1 : index
    %c2_125 = arith.constant 2 : index
    %c0_126 = arith.constant 0 : index
    %106 = vector.load %arg5[%c1_124, %c2_125, %c0_126] : memref<10x10x16xf32, #tpu.memory_space<vmem>>, vector<8x8x16xf32>
    %107 = vector.shape_cast %106 : vector<8x8x16xf32> to vector<64x16xf32>
    %c5_127 = arith.constant 5 : index
    %c0_128 = arith.constant 0 : index
    %c0_129 = arith.constant 0 : index
    %108 = vector.load %arg2[%c5_127, %c0_128, %c0_129] : memref<9x4x16xf32, #tpu.memory_space<vmem>>, vector<1x4x16xf32>
    %109 = vector.shape_cast %108 : vector<1x4x16xf32> to vector<4x16xf32>
    %cst_130 = arith.constant dense<0.000000e+00> : vector<4x64xf32>
    %110 = tpu.matmul %109, %107, %cst_130 {dimension_numbers = #tpu.dot_dimension_numbers<[1], [1], [0], [0], [0, 0, 1, 0], [], []>} : vector<4x16xf32>, vector<64x16xf32>, vector<4x64xf32> -> vector<4x64xf32>
    %111 = arith.addf %105, %110 : vector<4x64xf32>
    %c2_131 = arith.constant 2 : index
    %c0_132 = arith.constant 0 : index
    %c0_133 = arith.constant 0 : index
    %112 = vector.load %arg5[%c2_131, %c0_132, %c0_133] : memref<10x10x16xf32, #tpu.memory_space<vmem>>, vector<8x8x16xf32>
    %113 = vector.shape_cast %112 : vector<8x8x16xf32> to vector<64x16xf32>
    %c6_134 = arith.constant 6 : index
    %c0_135 = arith.constant 0 : index
    %c0_136 = arith.constant 0 : index
    %114 = vector.load %arg2[%c6_134, %c0_135, %c0_136] : memref<9x4x16xf32, #tpu.memory_space<vmem>>, vector<1x4x16xf32>
    %115 = vector.shape_cast %114 : vector<1x4x16xf32> to vector<4x16xf32>
    %cst_137 = arith.constant dense<0.000000e+00> : vector<4x64xf32>
    %116 = tpu.matmul %115, %113, %cst_137 {dimension_numbers = #tpu.dot_dimension_numbers<[1], [1], [0], [0], [0, 0, 1, 0], [], []>} : vector<4x16xf32>, vector<64x16xf32>, vector<4x64xf32> -> vector<4x64xf32>
    %117 = arith.addf %111, %116 : vector<4x64xf32>
    %c2_138 = arith.constant 2 : index
    %c1_139 = arith.constant 1 : index
    %c0_140 = arith.constant 0 : index
    %118 = vector.load %arg5[%c2_138, %c1_139, %c0_140] : memref<10x10x16xf32, #tpu.memory_space<vmem>>, vector<8x8x16xf32>
    %119 = vector.shape_cast %118 : vector<8x8x16xf32> to vector<64x16xf32>
    %c7_141 = arith.constant 7 : index
    %c0_142 = arith.constant 0 : index
    %c0_143 = arith.constant 0 : index
    %120 = vector.load %arg2[%c7_141, %c0_142, %c0_143] : memref<9x4x16xf32, #tpu.memory_space<vmem>>, vector<1x4x16xf32>
    %121 = vector.shape_cast %120 : vector<1x4x16xf32> to vector<4x16xf32>
    %cst_144 = arith.constant dense<0.000000e+00> : vector<4x64xf32>
    %122 = tpu.matmul %121, %119, %cst_144 {dimension_numbers = #tpu.dot_dimension_numbers<[1], [1], [0], [0], [0, 0, 1, 0], [], []>} : vector<4x16xf32>, vector<64x16xf32>, vector<4x64xf32> -> vector<4x64xf32>
    %123 = arith.addf %117, %122 : vector<4x64xf32>
    %c2_145 = arith.constant 2 : index
    %c2_146 = arith.constant 2 : index
    %c0_147 = arith.constant 0 : index
    %124 = vector.load %arg5[%c2_145, %c2_146, %c0_147] : memref<10x10x16xf32, #tpu.memory_space<vmem>>, vector<8x8x16xf32>
    %125 = vector.shape_cast %124 : vector<8x8x16xf32> to vector<64x16xf32>
    %c8_148 = arith.constant 8 : index
    %c0_149 = arith.constant 0 : index
    %c0_150 = arith.constant 0 : index
    %126 = vector.load %arg2[%c8_148, %c0_149, %c0_150] : memref<9x4x16xf32, #tpu.memory_space<vmem>>, vector<1x4x16xf32>
    %127 = vector.shape_cast %126 : vector<1x4x16xf32> to vector<4x16xf32>
    %cst_151 = arith.constant dense<0.000000e+00> : vector<4x64xf32>
    %128 = tpu.matmul %127, %125, %cst_151 {dimension_numbers = #tpu.dot_dimension_numbers<[1], [1], [0], [0], [0, 0, 1, 0], [], []>} : vector<4x16xf32>, vector<64x16xf32>, vector<4x64xf32> -> vector<4x64xf32>
    %129 = arith.addf %123, %128 : vector<4x64xf32>
    %c0_152 = arith.constant 0 : index
    %c0_153 = arith.constant 0 : index
    %130 = vector.load %arg3[%c0_152, %c0_153] : memref<4x1xf32, #tpu.memory_space<vmem>>, vector<4x1xf32>
    %131 = vector.broadcast %130 : vector<4x1xf32> to vector<4x64xf32>
    %132 = arith.addf %129, %131 : vector<4x64xf32>
    %c1_154 = arith.constant 1 : index
    %c0_155 = arith.constant 0 : index
    %c0_156 = arith.constant 0 : index
    %133 = vector.load %arg4[%c1_154, %c0_155, %c0_156] : memref<2x4x64xf32, #tpu.memory_space<vmem>>, vector<1x4x64xf32>
    %134 = vector.shape_cast %133 : vector<1x4x64xf32> to vector<4x64xf32>
    %135 = vector.shape_cast %132 : vector<4x64xf32> to vector<1x4x64xf32>
    tpu.vector_store %arg4[%c1_154, %c0_155, %c0_156], %135 {strides = array<i32>} : memref<2x4x64xf32, #tpu.memory_space<vmem>>, vector<1x4x64xf32>,
    return
  }
  func.func @transform_0(%arg0: i32) -> (i32, i32, i32, i32) {
    %c0_i32 = arith.constant 0 : i32
    %c0_i32_0 = arith.constant 0 : i32
    %c0_i32_1 = arith.constant 0 : i32
    %c0_i32_2 = arith.constant 0 : i32
    return %arg0, %c0_i32, %c0_i32_0, %c0_i32_1 : i32, i32, i32, i32
  }
  func.func @transform_1(%arg0: i32) -> (i32, i32, i32) {
    %c0_i32 = arith.constant 0 : i32
    %c0_i32_0 = arith.constant 0 : i32
    %c0_i32_1 = arith.constant 0 : i32
    %c0_i32_2 = arith.constant 0 : i32
    return %c0_i32, %c0_i32_0, %c0_i32_1 : i32, i32, i32
  }
  func.func @transform_2(%arg0: i32) -> (i32, i32) {
    %c0_i32 = arith.constant 0 : i32
    %c0_i32_0 = arith.constant 0 : i32
    %c0_i32_1 = arith.constant 0 : i32
    return %c0_i32, %c0_i32_0 : i32, i32
  }
  func.func @transform_3(%arg0: i32) -> (i32, i32, i32) {
    %c0_i32 = arith.constant 0 : i32
    %c0_i32_0 = arith.constant 0 : i32
    %c0_i32_1 = arith.constant 0 : i32
    return %arg0, %c0_i32, %c0_i32_0 : i32, i32, i32
  }
}

</mosaic_0001>

<bundles_post_ra>
// kernel: tpu_custom_call.1
= control target key start
LH: loop header
LB: loop body
LE: loop exit
PB: predicated region body
PF: predicated region fallthrough
CT: control target
= control target key end

     0   :  { %8 = vsyncpa [#allocation4], 0  ;;  %s3502_s0 = inlined_call_operand.hbm [shape: f32[2,8,8,16], index: 0, kind: input, shape index: {}]   ;;  %s3503_s1 = inlined_call_operand.hbm [shape: f32[9,4,16], index: 1, kind: input, shape index: {}]   ;;  %s3504_s2 = inlined_call_operand.vmem [shape: f32[4,1], index: 2, kind: input, shape index: {}]   ;;  %s3505_s3 = inlined_call_operand.hbm [shape: f32[2,4,64], index: 3, kind: output, shape index: {}]  }
   0x1   :  { %9 = vsyncpa [#allocation7], 0 }
   0x2   :  { %10 = vsyncpa [#allocation5], 0  ;;  %s2811_s12 = smov [#allocation3]  }
   0x3   :  { %s16_s13 = sshll.u32 %s2811_s12, 4  ;;  %s17_s13 = int_to_ptr.vmem [resolvable:$true] %s16_s13 }
   0x4   :  { %s2753_s14 = scalar_lea.vmem %s17_s13, 2048  ;;  %p2758_p1 = scmp.lt.s32.totalorder %s17_s13, %s17_s13 }
   0x5   :  { %p2754_p0 = scmp.ne.s32.totalorder %s17_s13, %s2753_s14  ;;  %p2759_p2 = scmp.lt.s32.totalorder %s2753_s14, %s2753_s14 }
   0x7   :  { %p2760_p3 = por %p2759_p2, %p2758_p1 }
   0x9   :  { %p2761_p4 = pnand %p2760_p3, %p2754_p0 }
   0xb   :  { %2764 = shalt.err (!%p2761_p4)
}
   0xc   :  { %s2812_s15 = smov 128   ;;  %s2813_s16 = smov 8  }
   0xd   :  { %22 = dma.hbm_to_vmem [thread:$0]  %s3502_s0, 2048, %s17_s13, [#allocation4], %s2812_s15, %s2812_s15, %s2813_s16  }
   0xe   :  { %s2814_s19 = smov [#allocation6]  }
   0xf   :  { %s28_s20 = sshll.u32 %s2814_s19, 4  ;;  %s29_s20 = int_to_ptr.vmem [resolvable:$true] %s28_s20 }
  0x10   :  { %s2773_s21 = scalar_lea.vmem %s29_s20, 576  ;;  %p2778_p6 = scmp.lt.s32.totalorder %s29_s20, %s29_s20 }
  0x11   :  { %p2774_p5 = scmp.ne.s32.totalorder %s29_s20, %s2773_s21  ;;  %p2779_p7 = scmp.lt.s32.totalorder %s2773_s21, %s2773_s21 }
  0x13   :  { %p2780_p8 = por %p2779_p7, %p2778_p6 }
  0x15   :  { %p2781_p9 = pnand %p2780_p8, %p2774_p5 }
  0x17   :  { %2784 = shalt.err (!%p2781_p9)
}
  0x18   :  { %s2815_s22 = smov 64   ;;  %s2816_s23 = smov 4  }
  0x19   :  { %34 = dma.hbm_to_vmem [thread:$0]  %s3503_s1, 576, %s29_s20, [#allocation7], %s2815_s22, %s2815_s22, %s2816_s23  }
  0x1a   :  { %2805 = dma.done.wait [#allocation4], 2048  }
  0x1b   :  { %2806 = vsyncadd [#allocation4], 4294965248 }
  0x1c   :  { %2807 = dma.done.wait [#allocation7], 576  }
  0x1d   :  { %2808 = vsyncadd [#allocation7], 4294966720  ;;  %vm43_vm0 = vcmask 130048   ;;  %vm51_vm1 = vcmask 122880   ;;  %vm45_vm2 = vcmask 123904   ;;  %v2817_v0 = vmov 0.0  }
  0x1e   :  { %2392 = vmatprep.subr.mxu0 %v2817_v0  ;;  %2411 = vmatprep.subr.mxu1 %v2817_v0  ;;  %44 = vst.msk [vmem:[#allocation2] sm:$0xff] %vm43_vm0, %v2817_v0  ;;  %48 = vst.msk [vmem:[#allocation2 + $0x90] sm:$0xff] %vm43_vm0, %v2817_v0  ;;  %vm2818_vm3 = vmmov 0   ;;  %v74_v1 = vld [vmem:[#allocation3 + $0x30] sm:$0xff]  ;;  %v73_v2 = vld [vmem:[#allocation3 + $0x28] sm:$0xff]  ;;  %v2819_v53 = vmov 0  }
  0x1f   :  { %58 = vst.msk [vmem:[#allocation2 + $0x70] sm:$0x1] %vm51_vm1, %v2817_v0  ;;  %52 = vst.msk [vmem:[#allocation2 + $0x10] sm:$0x1] %vm51_vm1, %v2817_v0  ;;  %2408 = vmatprep.mubr.msk.f32.mxu0 %vm2818_vm3, %v2817_v0  ;;  %2427 = vmatprep.mubr.msk.f32.mxu1 %vm2818_vm3, %v2817_v0  ;;  %v72_v3 = vld [vmem:[#allocation3 + $0x20] sm:$0xff]  ;;  %v71_v4 = vld [vmem:[#allocation3 + $0x18] sm:$0xff] }
  0x20   :  { %53 = vst.msk [vmem:[#allocation2 + $0x20] sm:$0x1] %vm51_vm1, %v2817_v0  ;;  %54 = vst.msk [vmem:[#allocation2 + $0x30] sm:$0x1] %vm51_vm1, %v2817_v0  ;;  %v70_v5 = vld [vmem:[#allocation3 + $0x10] sm:$0xff]  ;;  %v69_v6 = vld [vmem:[#allocation3 + $0x8] sm:$0xff]  ;;  %2744 = vset.pattern.permute.xlu0 %v2819_v53 }
  0x21   :  { %55 = vst.msk [vmem:[#allocation2 + $0x40] sm:$0x1] %vm51_vm1, %v2817_v0  ;;  %56 = vst.msk [vmem:[#allocation2 + $0x50] sm:$0x1] %vm51_vm1, %v2817_v0  ;;  %v68_v7 = vld [vmem:[#allocation3] sm:$0xff]  ;;  %v75_v8 = vld [vmem:[#allocation3 + $0x38] sm:$0xff] }
  0x22   :  { %57 = vst.msk [vmem:[#allocation2 + $0x60] sm:$0x1] %vm51_vm1, %v2817_v0  ;;  %59 = vst.msk [vmem:[#allocation2 + $0x80] sm:$0x1] %vm51_vm1, %v2817_v0  ;;  %v1070_v13 = vld [vmem:[#allocation3 + $0x70] sm:$0xff]  ;;  %v1069_v14 = vld [vmem:[#allocation3 + $0x68] sm:$0xff] }
  0x23   :  { %60 = vst.msk [vmem:[#allocation2 + $0x19] sm:$0x1] %vm51_vm1, %v2817_v0  ;;  %61 = vst.msk [vmem:[#allocation2 + $0x29] sm:$0x1] %vm51_vm1, %v2817_v0  ;;  %v1064_v16 = vld [vmem:[#allocation3 + $0x40] sm:$0xff]  ;;  %v1071_v33 = vld [vmem:[#allocation3 + $0x78] sm:$0xff] }
  0x24   :  { %62 = vst.msk [vmem:[#allocation2 + $0x39] sm:$0x1] %vm51_vm1, %v2817_v0  ;;  %63 = vst.msk [vmem:[#allocation2 + $0x49] sm:$0x1] %vm51_vm1, %v2817_v0  ;;  %v1068_v34 = vld [vmem:[#allocation3 + $0x60] sm:$0xff]  ;;  %v1067_v35 = vld [vmem:[#allocation3 + $0x58] sm:$0xff] }
  0x25   :  { %64 = vst.msk [vmem:[#allocation2 + $0x59] sm:$0x1] %vm51_vm1, %v2817_v0  ;;  %65 = vst.msk [vmem:[#allocation2 + $0x69] sm:$0x1] %vm51_vm1, %v2817_v0  ;;  %v1066_v36 = vld [vmem:[#allocation3 + $0x50] sm:$0xff]  ;;  %v1065_v40 = vld [vmem:[#allocation3 + $0x48] sm:$0xff] }
  0x26   :  { %66 = vst.msk [vmem:[#allocation2 + $0x79] sm:$0x1] %vm51_vm1, %v2817_v0  ;;  %67 = vst.msk [vmem:[#allocation2 + $0x89] sm:$0x1] %vm51_vm1, %v2817_v0  ;;  %v3004_v42 = vld [vmem:[#allocation2] sm:$0xff]  ;;  %v3122_v50 = vld [vmem:[#allocation2 + $0x90] sm:$0xff] }
  0x27   :  { %46 = vst.msk [vmem:[#allocation2 + $0x8] sm:$0x3] %vm45_vm2, %v2817_v0  ;;  %49 = vst.msk [vmem:[#allocation2 + $0x98] sm:$0x3] %vm45_vm2, %v2817_v0  ;;  %v102_v43 = vld [vmem:[#allocation6 + $0x4] sm:$0xf] }
  0x28   :  { %82 = vst.msk [vmem:[#allocation2 + $0x71] sm:$0xff] %vm43_vm0, %v74_v1  ;;  %81 = vst.msk [vmem:[#allocation2 + $0x61] sm:$0xff] %vm43_vm0, %v73_v2  ;;  %v92_v44 = vld [vmem:[#allocation6] sm:$0xf]  ;;  %v306_v46 = vld [vmem:[#allocation6 + $0x8] sm:$0xf] }
  0x29   :  { %80 = vst.msk [vmem:[#allocation2 + $0x51] sm:$0xff] %vm43_vm0, %v72_v3  ;;  %79 = vst.msk [vmem:[#allocation2 + $0x41] sm:$0xff] %vm43_vm0, %v71_v4  ;;  %v414_v47 = vld [vmem:[#allocation6 + $0xc] sm:$0xf]  ;;  %v522_v48 = vld [vmem:[#allocation6 + $0x10] sm:$0xf] }
  0x2a   :  { %78 = vst.msk [vmem:[#allocation2 + $0x31] sm:$0xff] %vm43_vm0, %v70_v5  ;;  %77 = vst.msk [vmem:[#allocation2 + $0x21] sm:$0xff] %vm43_vm0, %v69_v6  ;;  %v630_v49 = vld [vmem:[#allocation6 + $0x14] sm:$0xf]  ;;  %v1054_v52 = vld [vmem:[%s3504_s2] sm:$0xf] }
  0x2b   :  { %76 = vst.msk [vmem:[#allocation2 + $0x11] sm:$0xff] %vm43_vm0, %v68_v7  ;;  %83 = vst.msk [vmem:[#allocation2 + $0x81] sm:$0xff] %vm43_vm0, %v75_v8  ;;  %1057 = vperm.xlu0 %2744, %v1054_v52   ;;  %v739_v54 = vld [vmem:[#allocation6 + $0x18] sm:$0xf]  ;;  %v847_v55 = vld [vmem:[#allocation6 + $0x1c] sm:$0xf] }
  0x2c   :  { %v955_v1 = vld [vmem:[#allocation6 + $0x20] sm:$0xf]  ;;  %v1097_v2 = vld [vmem:[#allocation6 + $0x4] sm:$0xf]  ;;  %vm1061_vm4 = vcmask 519168  }
  0x2e   :  { %v3002_v41 = vld [vmem:[#allocation2 + $0x1] sm:$0xff]  ;;  %v3124_v51 = vld [vmem:[#allocation2 + $0x91] sm:$0xff] }
  0x2f   :  { %v2904_v9 = vld [vmem:[#allocation2 + $0x71] sm:$0xff]  ;;  %v2914_v11 = vld [vmem:[#allocation2 + $0x61] sm:$0xff] }
  0x30   :  { %v2906_v10 = vld [vmem:[#allocation2 + $0x70] sm:$0xff]  ;;  %2393 = vmatpush3.xpose.msk.msra.mxu0 %vm43_vm0, %v2904_v9  ;;  %v2916_v12 = vld [vmem:[#allocation2 + $0x60] sm:$0xff] }
  0x31   :  { %2412 = vmatpush3.xpose.msk.msra.mxu1 %vm43_vm0, %v2906_v10  ;;  %2394 = vmatprep.subr.mxu0 %v2817_v0  ;;  %v2918_v15 = vld [vmem:[#allocation2 + $0x72] sm:$0xff]  ;;  %v2928_v19 = vld [vmem:[#allocation2 + $0x62] sm:$0xff] }
  0x32   :  { %2413 = vmatprep.subr.mxu1 %v2817_v0  ;;  %v2924_v17 = vld [vmem:[#allocation2 + $0x51] sm:$0xff]  ;;  %1078 = vst.msk [vmem:[#allocation2 + $0x71] sm:$0xff] %vm43_vm0, %v1070_v13  ;;  %v2937_v22 = vld [vmem:[#allocation2 + $0x80] sm:$0xff]  ;;  %1077 = vst.msk [vmem:[#allocation2 + $0x61] sm:$0xff] %vm43_vm0, %v1069_v14 }
  0x33   :  { %v2926_v18 = vld [vmem:[#allocation2 + $0x50] sm:$0xff]  ;;  %v2940_v23 = vld [vmem:[#allocation2 + $0x41] sm:$0xff] }
  0x34   :  { %2395 = vmatpush3.xpose.msk.msra.mxu0 %vm43_vm0, %v2914_v11  ;;  %v2933_v20 = vld [vmem:[#allocation2 + $0x11] sm:$0xff]  ;;  %v2942_v24 = vld [vmem:[#allocation2 + $0x40] sm:$0xff] }
  0x35   :  { %2414 = vmatpush3.xpose.msk.msra.mxu1 %vm43_vm0, %v2916_v12  ;;  %2396 = vmatprep.subr.mxu0 %v2817_v0  ;;  %v2935_v21 = vld [vmem:[#allocation2 + $0x10] sm:$0xff]  ;;  %v2950_v28 = vld [vmem:[#allocation2 + $0x42] sm:$0xff] }
  0x36   :  { %2415 = vmatprep.subr.mxu1 %v2817_v0  ;;  %v2944_v25 = vld [vmem:[#allocation2 + $0x31] sm:$0xff]  ;;  %v2956_v31 = vld [vmem:[#allocation2 + $0x81] sm:$0xff]  ;;  %1075 = vst.msk [vmem:[#allocation2 + $0x41] sm:$0xff] %vm43_vm0, %v1067_v35 }
  0x37   :  { %v2946_v26 = vld [vmem:[#allocation2 + $0x30] sm:$0xff]  ;;  %v2958_v32 = vld [vmem:[#allocation2 + $0x82] sm:$0xff] }
  0x38   :  { %v2948_v27 = vld [vmem:[#allocation2 + $0x52] sm:$0xff]  ;;  %2397 = vmatpush3.xpose.msk.msra.mxu0 %vm43_vm0, %v2924_v17  ;;  %1079 = vst.msk [vmem:[#allocation2 + $0x81] sm:$0xff] %vm43_vm0, %v1071_v33  ;;  %v2971_v37 = vld [vmem:[#allocation2 + $0x21] sm:$0xff] }
  0x39   :  { %v2952_v29 = vld [vmem:[#allocation2 + $0x32] sm:$0xff]  ;;  %2416 = vmatpush3.xpose.msk.msra.mxu1 %vm43_vm0, %v2926_v18  ;;  %2398 = vmatprep.subr.mxu0 %v2817_v0  ;;  %1076 = vst.msk [vmem:[#allocation2 + $0x51] sm:$0xff] %vm43_vm0, %v1068_v34  ;;  %v2973_v38 = vld [vmem:[#allocation2 + $0x20] sm:$0xff] }
  0x3a   :  { %v2954_v30 = vld [vmem:[#allocation2 + $0x12] sm:$0xff]  ;;  %2417 = vmatprep.subr.mxu1 %v2817_v0  ;;  %1074 = vst.msk [vmem:[#allocation2 + $0x31] sm:$0xff] %vm43_vm0, %v1066_v36  ;;  %v2975_v39 = vld [vmem:[#allocation2 + $0x22] sm:$0xff] }
  0x3b   :  { %1072 = vst.msk [vmem:[#allocation2 + $0x11] sm:$0xff] %vm43_vm0, %v1064_v16  ;;  %1073 = vst.msk [vmem:[#allocation2 + $0x21] sm:$0xff] %vm43_vm0, %v1065_v40  ;;  %v3060_v45 = vld [vmem:[#allocation2 + $0x2] sm:$0xff]  ;;  %v3183_v56 = vld [vmem:[#allocation2 + $0x92] sm:$0xff] }
  0x3c   :  { %2399 = vmatpush3.xpose.msk.msra.mxu0 %vm43_vm0, %v2940_v23  ;;  %v3185_v57 = vld [vmem:[#allocation2 + $0x71] sm:$0xff]  ;;  %v3195_v58 = vld [vmem:[#allocation2 + $0x61] sm:$0xff] }
  0x3d   :  { %2418 = vmatpush3.xpose.msk.msra.mxu1 %vm43_vm0, %v2942_v24  ;;  %2400 = vmatprep.subr.mxu0 %v2817_v0  ;;  %v3215_v60 = vld [vmem:[#allocation2 + $0x41] sm:$0xff]  ;;  %v3253_v3 = vld [vmem:[#allocation2 + $0x70] sm:$0xff] }
  0x3e   :  { %2419 = vmatprep.subr.mxu1 %v2817_v0  ;;  %v3255_v4 = vld [vmem:[#allocation2 + $0x72] sm:$0xff]  ;;  %v3265_v5 = vld [vmem:[#allocation2 + $0x60] sm:$0xff] }
  0x3f   :  { %v3267_v6 = vld [vmem:[#allocation2 + $0x62] sm:$0xff] }
  0x40   :  { %2401 = vmatpush3.xpose.msk.msra.mxu0 %vm43_vm0, %v2944_v25  ;;  %v3207_v59 = vld [vmem:[#allocation2 + $0x51] sm:$0xff] }
  0x41   :  { %2420 = vmatpush3.xpose.msk.msra.mxu1 %vm43_vm0, %v2946_v26  ;;  %2402 = vmatprep.subr.mxu0 %v2817_v0  ;;  %v3223_v61 = vld [vmem:[#allocation2 + $0x31] sm:$0xff] }
  0x42   :  { %2421 = vmatprep.subr.mxu1 %v2817_v0  ;;  %v3231_v62 = vld [vmem:[#allocation2 + $0x21] sm:$0xff]  ;;  %v3239_v63 = vld [vmem:[#allocation2 + $0x11] sm:$0xff] }
  0x43   :  { %v3279_v7 = vld [vmem:[#allocation2 + $0x50] sm:$0xff]  ;;  %v3309_v13 = vld [vmem:[#allocation2 + $0x20] sm:$0xff] }
  0x44   :  { %2403 = vmatpush3.xpose.msk.msra.mxu0 %vm43_vm0, %v2971_v37  ;;  %v3281_v8 = vld [vmem:[#allocation2 + $0x52] sm:$0xff]  ;;  %v3311_v14 = vld [vmem:[#allocation2 + $0x22] sm:$0xff] }
  0x45   :  { %2422 = vmatpush3.xpose.msk.msra.mxu1 %vm43_vm0, %v2973_v38  ;;  %2404 = vmatprep.subr.mxu0 %v2817_v0  ;;  %v3319_v16 = vld [vmem:[#allocation2 + $0x12] sm:$0xff] }
  0x46   :  { %2423 = vmatprep.subr.mxu1 %v2817_v0 }
  0x48   :  { %2405 = vmatpush3.xpose.msk.msra.mxu0 %vm43_vm0, %v2933_v20 }
  0x49   :  { %2424 = vmatpush3.xpose.msk.msra.mxu1 %vm43_vm0, %v2935_v21  ;;  %2406 = vmatprep.subr.mxu0 %v2817_v0 }
  0x4a   :  { %2425 = vmatprep.subr.mxu1 %v2817_v0 }
  0x4c   :  { %2407 = vmatpush3.xpose.msk.msra.mxu0 %vm43_vm0, %v3002_v41 }
  0x4d   :  { %2426 = vmatpush3.xpose.msk.msra.mxu1 %vm43_vm0, %v3004_v42  ;;  %2430 = vmatprep.subr.mxu0 %v2817_v0 }
  0x4e   :  { %2449 = vmatprep.subr.mxu1 %v2817_v0 }
  0x4f   :  { %2409 = vmatmul.mubr.msk.f32.vlgmr.msra.gmra.mxu0 %vm43_vm0, %v102_v43 }
  0x50   :  { %2428 = vmatmul.mubr.msk.f32.vlgmr.msra.gmra.mxu1 %vm43_vm0, %v92_v44  ;;  %2431 = vmatpush3.xpose.msk.msra.mxu0 %vm43_vm0, %v2918_v15 }
  0x51   :  { %2450 = vmatpush3.xpose.msk.msra.mxu1 %vm43_vm0, %v2937_v22  ;;  %2432 = vmatprep.subr.mxu0 %v2817_v0 }
  0x52   :  { %2451 = vmatprep.subr.mxu1 %v2817_v0  ;;  %2446 = vmatprep.mubr.msk.f32.mxu0 %vm2818_vm3, %v2817_v0 }
  0x53   :  { %2465 = vmatprep.mubr.msk.f32.mxu1 %vm2818_vm3, %v2817_v0 }
  0x54   :  { %2433 = vmatpush3.xpose.msk.msra.mxu0 %vm43_vm0, %v2928_v19 }
  0x55   :  { %2452 = vmatpush3.xpose.msk.msra.mxu1 %vm43_vm0, %v2906_v10  ;;  %2434 = vmatprep.subr.mxu0 %v2817_v0 }
  0x56   :  { %2453 = vmatprep.subr.mxu1 %v2817_v0 }
  0x58   :  { %2435 = vmatpush3.xpose.msk.msra.mxu0 %vm43_vm0, %v2948_v27 }
  0x59   :  { %2454 = vmatpush3.xpose.msk.msra.mxu1 %vm43_vm0, %v2916_v12  ;;  %2436 = vmatprep.subr.mxu0 %v2817_v0 }
  0x5a   :  { %2455 = vmatprep.subr.mxu1 %v2817_v0 }
  0x5c   :  { %2437 = vmatpush3.xpose.msk.msra.mxu0 %vm43_vm0, %v2950_v28 }
  0x5d   :  { %2456 = vmatpush3.xpose.msk.msra.mxu1 %vm43_vm0, %v2926_v18  ;;  %2438 = vmatprep.subr.mxu0 %v2817_v0 }
  0x5e   :  { %2457 = vmatprep.subr.mxu1 %v2817_v0 }
  0x60   :  { %2439 = vmatpush3.xpose.msk.msra.mxu0 %vm43_vm0, %v2952_v29 }
  0x61   :  { %2458 = vmatpush3.xpose.msk.msra.mxu1 %vm43_vm0, %v2942_v24  ;;  %2440 = vmatprep.subr.mxu0 %v2817_v0 }
  0x62   :  { %2459 = vmatprep.subr.mxu1 %v2817_v0 }
  0x64   :  { %2441 = vmatpush3.xpose.msk.msra.mxu0 %vm43_vm0, %v2975_v39 }
  0x65   :  { %2460 = vmatpush3.xpose.msk.msra.mxu1 %vm43_vm0, %v2946_v26  ;;  %2442 = vmatprep.subr.mxu0 %v2817_v0 }
  0x66   :  { %2461 = vmatprep.subr.mxu1 %v2817_v0 }
  0x68   :  { %2443 = vmatpush3.xpose.msk.msra.mxu0 %vm43_vm0, %v2954_v30 }
  0x69   :  { %2462 = vmatpush3.xpose.msk.msra.mxu1 %vm43_vm0, %v2973_v38  ;;  %2444 = vmatprep.subr.mxu0 %v2817_v0 }
  0x6a   :  { %2463 = vmatprep.subr.mxu1 %v2817_v0 }
  0x6c   :  { %2445 = vmatpush3.xpose.msk.msra.mxu0 %vm43_vm0, %v3060_v45 }
  0x6d   :  { %2464 = vmatpush3.xpose.msk.msra.mxu1 %vm43_vm0, %v2935_v21  ;;  %2468 = vmatprep.subr.mxu0 %v2817_v0  ;;  %v1407_v21 = vld [vmem:[#allocation6 + $0xc] sm:$0xf] }
  0x6e   :  { %2487 = vmatprep.subr.mxu1 %v2817_v0 }
  0x6f   :  { %2447 = vmatmul.mubr.msk.f32.vlgmr.msra.gmra.mxu0 %vm43_vm0, %v306_v46 }
  0x70   :  { %2466 = vmatmul.mubr.msk.f32.vlgmr.msra.gmra.mxu1 %vm43_vm0, %v414_v47  ;;  %2469 = vmatpush3.xpose.msk.msra.mxu0 %vm43_vm0, %v2956_v31 }
  0x71   :  { %2488 = vmatpush3.xpose.msk.msra.mxu1 %vm43_vm0, %v2958_v32  ;;  %2470 = vmatprep.subr.mxu0 %v2817_v0 }
  0x72   :  { %2489 = vmatprep.subr.mxu1 %v2817_v0  ;;  %2484 = vmatprep.mubr.msk.f32.mxu0 %vm2818_vm3, %v2817_v0 }
  0x73   :  { %2503 = vmatprep.mubr.msk.f32.mxu1 %vm2818_vm3, %v2817_v0 }
  0x74   :  { %2471 = vmatpush3.xpose.msk.msra.mxu0 %vm43_vm0, %v2904_v9 }
  0x75   :  { %2490 = vmatpush3.xpose.msk.msra.mxu1 %vm43_vm0, %v2918_v15  ;;  %2472 = vmatprep.subr.mxu0 %v2817_v0 }
  0x76   :  { %2491 = vmatprep.subr.mxu1 %v2817_v0 }
  0x78   :  { %2473 = vmatpush3.xpose.msk.msra.mxu0 %vm43_vm0, %v2914_v11 }
  0x79   :  { %2492 = vmatpush3.xpose.msk.msra.mxu1 %vm43_vm0, %v2928_v19  ;;  %2474 = vmatprep.subr.mxu0 %v2817_v0 }
  0x7a   :  { %2493 = vmatprep.subr.mxu1 %v2817_v0 }
  0x7c   :  { %2475 = vmatpush3.xpose.msk.msra.mxu0 %vm43_vm0, %v2924_v17 }
  0x7d   :  { %2494 = vmatpush3.xpose.msk.msra.mxu1 %vm43_vm0, %v2948_v27  ;;  %2476 = vmatprep.subr.mxu0 %v2817_v0 }
  0x7e   :  { %2495 = vmatprep.subr.mxu1 %v2817_v0 }
  0x80   :  { %2477 = vmatpush3.xpose.msk.msra.mxu0 %vm43_vm0, %v2940_v23 }
  0x81   :  { %2496 = vmatpush3.xpose.msk.msra.mxu1 %vm43_vm0, %v2950_v28  ;;  %2478 = vmatprep.subr.mxu0 %v2817_v0 }
  0x82   :  { %2497 = vmatprep.subr.mxu1 %v2817_v0 }
  0x84   :  { %2479 = vmatpush3.xpose.msk.msra.mxu0 %vm43_vm0, %v2944_v25 }
  0x85   :  { %2498 = vmatpush3.xpose.msk.msra.mxu1 %vm43_vm0, %v2952_v29  ;;  %2480 = vmatprep.subr.mxu0 %v2817_v0 }
  0x86   :  { %2499 = vmatprep.subr.mxu1 %v2817_v0 }
  0x88   :  { %2481 = vmatpush3.xpose.msk.msra.mxu0 %vm43_vm0, %v2971_v37 }
  0x89   :  { %2500 = vmatpush3.xpose.msk.msra.mxu1 %vm43_vm0, %v2975_v39  ;;  %2482 = vmatprep.subr.mxu0 %v2817_v0 }
  0x8a   :  { %2501 = vmatprep.subr.mxu1 %v2817_v0 }
  0x8c   :  { %2483 = vmatpush3.xpose.msk.msra.mxu0 %vm43_vm0, %v2933_v20  ;;  %v3332_v20 = vld [vmem:[#allocation2 + $0x81] sm:$0xff] }
  0x8d   :  { %2502 = vmatpush3.xpose.msk.msra.mxu1 %vm43_vm0, %v2954_v30  ;;  %2506 = vmatprep.subr.mxu0 %v2817_v0  ;;  %v1621_v30 = vld [vmem:[#allocation6 + $0x14] sm:$0xf] }
  0x8e   :  { %2525 = vmatprep.subr.mxu1 %v2817_v0 }
  0x8f   :  { %2485 = vmatmul.mubr.msk.f32.vlgmr.msra.gmra.mxu0 %vm43_vm0, %v522_v48 }
  0x90   :  { %2504 = vmatmul.mubr.msk.f32.vlgmr.msra.gmra.mxu1 %vm43_vm0, %v630_v49  ;;  %2507 = vmatpush3.xpose.msk.msra.mxu0 %vm43_vm0, %v3122_v50 }
  0x91   :  { %2526 = vmatpush3.xpose.msk.msra.mxu1 %vm43_vm0, %v3124_v51  ;;  %2508 = vmatprep.subr.mxu0 %v2817_v0 }
  0x92   :  { %2527 = vmatprep.subr.mxu1 %v2817_v0  ;;  %2522 = vmatprep.mubr.msk.f32.mxu0 %vm2818_vm3, %v2817_v0 }
  0x93   :  { %2541 = vmatprep.mubr.msk.f32.mxu1 %vm2818_vm3, %v2817_v0 }
  0x94   :  { %2509 = vmatpush3.xpose.msk.msra.mxu0 %vm43_vm0, %v2937_v22  ;;  %v1514_v22 = vld [vmem:[#allocation6 + $0x10] sm:$0xf] }
  0x95   :  { %2528 = vmatpush3.xpose.msk.msra.mxu1 %vm43_vm0, %v2956_v31  ;;  %2510 = vmatprep.subr.mxu0 %v2817_v0  ;;  %v1728_v31 = vld [vmem:[#allocation6 + $0x18] sm:$0xf] }
  0x96   :  { %2529 = vmatprep.subr.mxu1 %v2817_v0 }
  0x98   :  { %2511 = vmatpush3.xpose.msk.msra.mxu0 %vm43_vm0, %v2906_v10  ;;  %v3291_v10 = vld [vmem:[#allocation2 + $0x42] sm:$0xff] }
  0x99   :  { %2530 = vmatpush3.xpose.msk.msra.mxu1 %vm43_vm0, %v2904_v9  ;;  %2512 = vmatprep.subr.mxu0 %v2817_v0  ;;  %v3289_v9 = vld [vmem:[#allocation2 + $0x40] sm:$0xff] }
  0x9a   :  { %2531 = vmatprep.subr.mxu1 %v2817_v0 }
  0x9c   :  { %2513 = vmatpush3.xpose.msk.msra.mxu0 %vm43_vm0, %v2916_v12  ;;  %v3301_v12 = vld [vmem:[#allocation2 + $0x32] sm:$0xff] }
  0x9d   :  { %2532 = vmatpush3.xpose.msk.msra.mxu1 %vm43_vm0, %v2914_v11  ;;  %2514 = vmatprep.subr.mxu0 %v2817_v0  ;;  %v3299_v11 = vld [vmem:[#allocation2 + $0x30] sm:$0xff] }
  0x9e   :  { %2533 = vmatprep.subr.mxu1 %v2817_v0 }
  0xa0   :  { %2515 = vmatpush3.xpose.msk.msra.mxu0 %vm43_vm0, %v2926_v18  ;;  %v1300_v18 = vld [vmem:[#allocation6 + $0x8] sm:$0xf] }
  0xa1   :  { %2534 = vmatpush3.xpose.msk.msra.mxu1 %vm43_vm0, %v2924_v17  ;;  %2516 = vmatprep.subr.mxu0 %v2817_v0  ;;  %v1088_v17 = vld [vmem:[#allocation6] sm:$0xf] }
  0xa2   :  { %2535 = vmatprep.subr.mxu1 %v2817_v0 }
  0xa4   :  { %2517 = vmatpush3.xpose.msk.msra.mxu0 %vm43_vm0, %v2942_v24 }
  0xa5   :  { %2536 = vmatpush3.xpose.msk.msra.mxu1 %vm43_vm0, %v2940_v23  ;;  %2518 = vmatprep.subr.mxu0 %v2817_v0  ;;  %v1620_v23 = vld [vmem:[#allocation2 + $0x82] sm:$0xff] }
  0xa6   :  { %2537 = vmatprep.subr.mxu1 %v2817_v0 }
  0xa8   :  { %2519 = vmatpush3.xpose.msk.msra.mxu0 %vm43_vm0, %v2946_v26 }
  0xa9   :  { %2538 = vmatpush3.xpose.msk.msra.mxu1 %vm43_vm0, %v2944_v25  ;;  %2520 = vmatprep.subr.mxu0 %v2817_v0 }
  0xaa   :  { %2539 = vmatprep.subr.mxu1 %v2817_v0 }
  0xac   :  { %2521 = vmatpush3.xpose.msk.msra.mxu0 %vm43_vm0, %v2973_v38  ;;  %v1835_v38 = vld [vmem:[#allocation6 + $0x1c] sm:$0xf] }
  0xad   :  { %2540 = vmatpush3.xpose.msk.msra.mxu1 %vm43_vm0, %v2971_v37  ;;  %2544 = vmatprep.subr.mxu0 %v2817_v0 }
  0xae   :  { %2563 = vmatprep.subr.mxu1 %v2817_v0 }
  0xaf   :  { %2523 = vmatmul.mubr.msk.f32.vlgmr.msra.gmra.mxu0 %vm43_vm0, %v739_v54 }
  0xb0   :  { %2542 = vmatmul.mubr.msk.f32.vlgmr.msra.gmra.mxu1 %vm43_vm0, %v847_v55  ;;  %2545 = vmatpush3.xpose.msk.msra.mxu0 %vm43_vm0, %v3183_v56 }
  0xb1   :  { %2564 = vmatpush3.xpose.msk.msra.mxu1 %vm43_vm0, %v3185_v57  ;;  %2546 = vmatprep.subr.mxu0 %v2817_v0 }
  0xb2   :  { %2565 = vmatprep.subr.mxu1 %v2817_v0  ;;  %2560 = vmatprep.mubr.msk.f32.mxu0 %vm2818_vm3, %v2817_v0 }
  0xb3   :  { %2579 = vmatprep.mubr.msk.f32.mxu1 %vm2818_vm3, %v2817_v0 }
  0xb4   :  { %2547 = vmatpush3.xpose.msk.msra.mxu0 %vm43_vm0, %v2958_v32 }
  0xb5   :  { %2566 = vmatpush3.xpose.msk.msra.mxu1 %vm43_vm0, %v3195_v58  ;;  %2548 = vmatprep.subr.mxu0 %v2817_v0 }
  0xb6   :  { %2567 = vmatprep.subr.mxu1 %v2817_v0 }
  0xb8   :  { %2549 = vmatpush3.xpose.msk.msra.mxu0 %vm43_vm0, %v2918_v15  ;;  %v1081_v15 = vld [vmem:[#allocation2 + $0x10] sm:$0xff] }
  0xb9   :  { %2568 = vmatpush3.xpose.msk.msra.mxu1 %vm43_vm0, %v3207_v59  ;;  %2550 = vmatprep.subr.mxu0 %v2817_v0 }
  0xba   :  { %2569 = vmatprep.subr.mxu1 %v2817_v0 }
  0xbc   :  { %2551 = vmatpush3.xpose.msk.msra.mxu0 %vm43_vm0, %v2928_v19  ;;  %v1406_v19 = vld [vmem:[#allocation2 + $0x80] sm:$0xff] }
  0xbd   :  { %2570 = vmatpush3.xpose.msk.msra.mxu1 %vm43_vm0, %v3215_v60  ;;  %2552 = vmatprep.subr.mxu0 %v2817_v0 }
  0xbe   :  { %2571 = vmatprep.subr.mxu1 %v2817_v0 }
  0xc0   :  { %2553 = vmatpush3.xpose.msk.msra.mxu0 %vm43_vm0, %v2948_v27 }
  0xc1   :  { %2572 = vmatpush3.xpose.msk.msra.mxu1 %vm43_vm0, %v3223_v61  ;;  %2554 = vmatprep.subr.mxu0 %v2817_v0 }
  0xc2   :  { %2573 = vmatprep.subr.mxu1 %v2817_v0 }
  0xc4   :  { %2555 = vmatpush3.xpose.msk.msra.mxu0 %vm43_vm0, %v2950_v28 }
  0xc5   :  { %2574 = vmatpush3.xpose.msk.msra.mxu1 %vm43_vm0, %v3231_v62  ;;  %2556 = vmatprep.subr.mxu0 %v2817_v0 }
  0xc6   :  { %2575 = vmatprep.subr.mxu1 %v2817_v0 }
  0xc8   :  { %2557 = vmatpush3.xpose.msk.msra.mxu0 %vm43_vm0, %v2952_v29  ;;  %v2041_v29 = vld [vmem:[%s3504_s2] sm:$0xf]  ;;  %s2820_s2 = smov [#allocation8]  }
  0xc9   :  { %2576 = vmatpush3.xpose.msk.msra.mxu1 %vm43_vm0, %v3239_v63  ;;  %2558 = vmatprep.subr.mxu0 %v2817_v0  ;;  %s2055_s28 = sshll.u32 %s2820_s2, 4  ;;  %s2056_s28 = int_to_ptr.vmem [resolvable:$true] %s2055_s28 }
  0xca   :  { %2577 = vmatprep.subr.mxu1 %v2817_v0  ;;  %2044 = vperm.xlu0 %2744, %v2041_v29   ;;  %s2785_s29 = scalar_lea.vmem %s2056_s28, 128  ;;  %p2790_p11 = scmp.lt.s32.totalorder %s2056_s28, %s2056_s28 }
  0xcb   :  { %p2786_p10 = scmp.ne.s32.totalorder %s2056_s28, %s2785_s29  ;;  %p2791_p12 = scmp.lt.s32.totalorder %s2785_s29, %s2785_s29 }
  0xcc   :  { %2559 = vmatpush3.xpose.msk.msra.mxu0 %vm43_vm0, %v2975_v39  ;;  %v1942_v39 = vld [vmem:[#allocation6 + $0x20] sm:$0xf] }
  0xcd   :  { %2578 = vmatpush3.xpose.msk.msra.mxu1 %vm43_vm0, %v3002_v41  ;;  %2582 = vmatprep.subr.mxu0 %v2817_v0  ;;  %p2792_p13 = por %p2791_p12, %p2790_p11 }
  0xce   :  { %2601 = vmatprep.subr.mxu1 %v2817_v0 }
  0xcf   :  { %2561 = vmatmul.mubr.msk.f32.vlgmr.msra.gmra.mxu0 %vm43_vm0, %v955_v1  ;;  %p2793_p0 = pnand %p2792_p13, %p2786_p10 }
  0xd0   :  { %2580 = vmatmul.mubr.msk.f32.vlgmr.msra.gmra.mxu1 %vm43_vm0, %v1097_v2  ;;  %2583 = vmatpush3.xpose.msk.msra.mxu0 %vm43_vm0, %v3253_v3 }
  0xd1   :  { %2602 = vmatpush3.xpose.msk.msra.mxu1 %vm43_vm0, %v3255_v4  ;;  %2584 = vmatprep.subr.mxu0 %v2817_v0 }
  0xd2   :  { %2603 = vmatprep.subr.mxu1 %v2817_v0  ;;  %2598 = vmatprep.mubr.msk.f32.mxu0 %vm2818_vm3, %v2817_v0 }
  0xd3   :  { %2617 = vmatprep.mubr.msk.f32.mxu1 %vm2818_vm3, %v2817_v0 }
  0xd4   :  { %2585 = vmatpush3.xpose.msk.msra.mxu0 %vm43_vm0, %v3265_v5 }
  0xd5   :  { %2604 = vmatpush3.xpose.msk.msra.mxu1 %vm43_vm0, %v3267_v6  ;;  %2586 = vmatprep.subr.mxu0 %v2817_v0 }
  0xd6   :  { %2605 = vmatprep.subr.mxu1 %v2817_v0 }
  0xd8   :  { %2587 = vmatpush3.xpose.msk.msra.mxu0 %vm43_vm0, %v3279_v7 }
  0xd9   :  { %2606 = vmatpush3.xpose.msk.msra.mxu1 %vm43_vm0, %v3281_v8  ;;  %2588 = vmatprep.subr.mxu0 %v2817_v0 }
  0xda   :  { %2607 = vmatprep.subr.mxu1 %v2817_v0 }
  0xdc   :  { %2589 = vmatpush3.xpose.msk.msra.mxu0 %vm43_vm0, %v3289_v9 }
  0xdd   :  { %2608 = vmatpush3.xpose.msk.msra.mxu1 %vm43_vm0, %v3291_v10  ;;  %2590 = vmatprep.subr.mxu0 %v2817_v0 }
  0xde   :  { %2609 = vmatprep.subr.mxu1 %v2817_v0 }
  0xe0   :  { %2591 = vmatpush3.xpose.msk.msra.mxu0 %vm43_vm0, %v3299_v11 }
  0xe1   :  { %2610 = vmatpush3.xpose.msk.msra.mxu1 %vm43_vm0, %v3301_v12  ;;  %2592 = vmatprep.subr.mxu0 %v2817_v0 }
  0xe2   :  { %2611 = vmatprep.subr.mxu1 %v2817_v0 }
  0xe4   :  { %2593 = vmatpush3.xpose.msk.msra.mxu0 %vm43_vm0, %v3309_v13 }
  0xe5   :  { %2612 = vmatpush3.xpose.msk.msra.mxu1 %vm43_vm0, %v3311_v14  ;;  %2594 = vmatprep.subr.mxu0 %v2817_v0 }
  0xe6   :  { %2613 = vmatprep.subr.mxu1 %v2817_v0 }
  0xe8   :  { %2595 = vmatpush3.xpose.msk.msra.mxu0 %vm43_vm0, %v1081_v15 }
  0xe9   :  { %2614 = vmatpush3.xpose.msk.msra.mxu1 %vm43_vm0, %v3319_v16  ;;  %2596 = vmatprep.subr.mxu0 %v2817_v0 }
  0xea   :  { %2615 = vmatprep.subr.mxu1 %v2817_v0 }
  0xec   :  { %2597 = vmatpush3.xpose.msk.msra.mxu0 %vm43_vm0, %v3004_v42 }
  0xed   :  { %2616 = vmatpush3.xpose.msk.msra.mxu1 %vm43_vm0, %v3060_v45  ;;  %2620 = vmatprep.subr.mxu0 %v2817_v0 }
  0xee   :  { %2639 = vmatprep.subr.mxu1 %v2817_v0 }
  0xef   :  { %2599 = vmatmul.mubr.msk.f32.vlgmr.msra.gmra.mxu0 %vm43_vm0, %v1088_v17 }
  0xf0   :  { %2618 = vmatmul.mubr.msk.f32.vlgmr.msra.gmra.mxu1 %vm43_vm0, %v1300_v18  ;;  %2621 = vmatpush3.xpose.msk.msra.mxu0 %vm43_vm0, %v1406_v19 }
  0xf1   :  { %2640 = vmatpush3.xpose.msk.msra.mxu1 %vm43_vm0, %v3332_v20  ;;  %2622 = vmatprep.subr.mxu0 %v2817_v0 }
  0xf2   :  { %2641 = vmatprep.subr.mxu1 %v2817_v0  ;;  %2636 = vmatprep.mubr.msk.f32.mxu0 %vm2818_vm3, %v2817_v0 }
  0xf3   :  { %2655 = vmatprep.mubr.msk.f32.mxu1 %vm2818_vm3, %v2817_v0 }
  0xf4   :  { %2623 = vmatpush3.xpose.msk.msra.mxu0 %vm43_vm0, %v3253_v3 }
  0xf5   :  { %2642 = vmatpush3.xpose.msk.msra.mxu1 %vm43_vm0, %v3185_v57  ;;  %2624 = vmatprep.subr.mxu0 %v2817_v0 }
  0xf6   :  { %2643 = vmatprep.subr.mxu1 %v2817_v0 }
  0xf8   :  { %2625 = vmatpush3.xpose.msk.msra.mxu0 %vm43_vm0, %v3265_v5 }
  0xf9   :  { %2644 = vmatpush3.xpose.msk.msra.mxu1 %vm43_vm0, %v3195_v58  ;;  %2626 = vmatprep.subr.mxu0 %v2817_v0 }
  0xfa   :  { %2645 = vmatprep.subr.mxu1 %v2817_v0 }
  0xfc   :  { %2627 = vmatpush3.xpose.msk.msra.mxu0 %vm43_vm0, %v3279_v7 }
  0xfd   :  { %2646 = vmatpush3.xpose.msk.msra.mxu1 %vm43_vm0, %v3207_v59  ;;  %2628 = vmatprep.subr.mxu0 %v2817_v0 }
  0xfe   :  { %2647 = vmatprep.subr.mxu1 %v2817_v0 }
 0x100   :  { %2629 = vmatpush3.xpose.msk.msra.mxu0 %vm43_vm0, %v3289_v9 }
 0x101   :  { %2648 = vmatpush3.xpose.msk.msra.mxu1 %vm43_vm0, %v3215_v60  ;;  %2630 = vmatprep.subr.mxu0 %v2817_v0 }
 0x102   :  { %2649 = vmatprep.subr.mxu1 %v2817_v0 }
 0x104   :  { %2631 = vmatpush3.xpose.msk.msra.mxu0 %vm43_vm0, %v3299_v11 }
 0x105   :  { %2650 = vmatpush3.xpose.msk.msra.mxu1 %vm43_vm0, %v3223_v61  ;;  %2632 = vmatprep.subr.mxu0 %v2817_v0 }
 0x106   :  { %2651 = vmatprep.subr.mxu1 %v2817_v0 }
 0x108   :  { %2633 = vmatpush3.xpose.msk.msra.mxu0 %vm43_vm0, %v3309_v13 }
 0x109   :  { %2652 = vmatpush3.xpose.msk.msra.mxu1 %vm43_vm0, %v3231_v62  ;;  %2634 = vmatprep.subr.mxu0 %v2817_v0 }
 0x10a   :  { %2653 = vmatprep.subr.mxu1 %v2817_v0 }
 0x10c   :  { %2635 = vmatpush3.xpose.msk.msra.mxu0 %vm43_vm0, %v1081_v15 }
 0x10d   :  { %2654 = vmatpush3.xpose.msk.msra.mxu1 %vm43_vm0, %v3239_v63  ;;  %2658 = vmatprep.subr.mxu0 %v2817_v0 }
 0x10e   :  { %2677 = vmatprep.subr.mxu1 %v2817_v0 }
 0x10f   :  { %v196_v24 = vpop.f32.mrf.mxu0  ;;  %2637 = vmatmul.mubr.msk.f32.vlgmr.msra.gmra.mxu0 %vm43_vm0, %v1407_v21 }
 0x110   :  { %v293_v25 = vpop.f32.mrf.mxu1  ;;  %2656 = vmatmul.mubr.msk.f32.vlgmr.msra.gmra.mxu1 %vm43_vm0, %v1514_v22  ;;  %2659 = vmatpush3.xpose.msk.msra.mxu0 %vm43_vm0, %v1620_v23 }
 0x111   :  { %v294_v26 = vadd.f32 %v293_v25, %v196_v24  ;;  %2678 = vmatpush3.xpose.msk.msra.mxu1 %vm43_vm0, %v3122_v50  ;;  %v2410_v27 = vpop.f32.mrf.mxu0  ;;  %2660 = vmatprep.subr.mxu0 %v2817_v0 }
 0x112   :  { %v2429_v28 = vpop.f32.mrf.mxu1  ;;  %2679 = vmatprep.subr.mxu1 %v2817_v0  ;;  %2674 = vmatprep.mubr.msk.f32.mxu0 %vm2818_vm3, %v2817_v0 }
 0x113   :  { %2693 = vmatprep.mubr.msk.f32.mxu1 %vm2818_vm3, %v2817_v0 }
 0x114   :  { %2661 = vmatpush3.xpose.msk.msra.mxu0 %vm43_vm0, %v3255_v4 }
 0x115   :  { %2680 = vmatpush3.xpose.msk.msra.mxu1 %vm43_vm0, %v1406_v19  ;;  %2662 = vmatprep.subr.mxu0 %v2817_v0 }
 0x116   :  { %2681 = vmatprep.subr.mxu1 %v2817_v0 }
 0x118   :  { %2663 = vmatpush3.xpose.msk.msra.mxu0 %vm43_vm0, %v3267_v6 }
 0x119   :  { %2682 = vmatpush3.xpose.msk.msra.mxu1 %vm43_vm0, %v3253_v3  ;;  %2664 = vmatprep.subr.mxu0 %v2817_v0 }
 0x11a   :  { %2683 = vmatprep.subr.mxu1 %v2817_v0 }
 0x11c   :  { %2665 = vmatpush3.xpose.msk.msra.mxu0 %vm43_vm0, %v3281_v8 }
 0x11d   :  { %2684 = vmatpush3.xpose.msk.msra.mxu1 %vm43_vm0, %v3265_v5  ;;  %2666 = vmatprep.subr.mxu0 %v2817_v0 }
 0x11e   :  { %2685 = vmatprep.subr.mxu1 %v2817_v0 }
 0x120   :  { %2667 = vmatpush3.xpose.msk.msra.mxu0 %vm43_vm0, %v3291_v10 }
 0x121   :  { %2686 = vmatpush3.xpose.msk.msra.mxu1 %vm43_vm0, %v3279_v7  ;;  %2668 = vmatprep.subr.mxu0 %v2817_v0 }
 0x122   :  { %2687 = vmatprep.subr.mxu1 %v2817_v0 }
 0x124   :  { %2669 = vmatpush3.xpose.msk.msra.mxu0 %vm43_vm0, %v3301_v12 }
 0x125   :  { %2688 = vmatpush3.xpose.msk.msra.mxu1 %vm43_vm0, %v3289_v9  ;;  %2670 = vmatprep.subr.mxu0 %v2817_v0 }
 0x126   :  { %2689 = vmatprep.subr.mxu1 %v2817_v0 }
 0x128   :  { %2671 = vmatpush3.xpose.msk.msra.mxu0 %vm43_vm0, %v3311_v14 }
 0x129   :  { %2690 = vmatpush3.xpose.msk.msra.mxu1 %vm43_vm0, %v3299_v11  ;;  %2672 = vmatprep.subr.mxu0 %v2817_v0 }
 0x12a   :  { %2691 = vmatprep.subr.mxu1 %v2817_v0 }
 0x12c   :  { %2673 = vmatpush3.xpose.msk.msra.mxu0 %vm43_vm0, %v3319_v16 }
 0x12d   :  { %2692 = vmatpush3.xpose.msk.msra.mxu1 %vm43_vm0, %v3309_v13  ;;  %2696 = vmatprep.subr.mxu0 %v2817_v0 }
 0x12e   :  { %2715 = vmatprep.subr.mxu1 %v2817_v0 }
 0x12f   :  { %v400_v32 = vpop.f32.mrf.mxu0  ;;  %2675 = vmatmul.mubr.msk.f32.vlgmr.msra.gmra.mxu0 %vm43_vm0, %v1621_v30 }
 0x130   :  { %v508_v33 = vpop.f32.mrf.mxu1  ;;  %2694 = vmatmul.mubr.msk.f32.vlgmr.msra.gmra.mxu1 %vm43_vm0, %v1728_v31  ;;  %v404_v34 = vadd.f32 %v400_v32, %v294_v26  ;;  %2697 = vmatpush3.xpose.msk.msra.mxu0 %vm43_vm0, %v3124_v51  ;;  %v1058_v51 = vpop.permute.xlu0 %1057 }
 0x131   :  { %2716 = vmatpush3.xpose.msk.msra.mxu1 %vm43_vm0, %v3183_v56  ;;  %v2448_v35 = vpop.f32.mrf.mxu0  ;;  %2698 = vmatprep.subr.mxu0 %v2817_v0 }
 0x132   :  { %v2467_v36 = vpop.f32.mrf.mxu1  ;;  %2717 = vmatprep.subr.mxu1 %v2817_v0  ;;  %v512_v37 = vadd.f32 %v508_v33, %v404_v34  ;;  %2712 = vmatprep.mubr.msk.f32.mxu0 %vm2818_vm3, %v2817_v0 }
 0x133   :  { %2731 = vmatprep.mubr.msk.f32.mxu1 %vm2818_vm3, %v2817_v0 }
 0x134   :  { %2699 = vmatpush3.xpose.msk.msra.mxu0 %vm43_vm0, %v3332_v20 }
 0x135   :  { %2718 = vmatpush3.xpose.msk.msra.mxu1 %vm43_vm0, %v1620_v23  ;;  %2700 = vmatprep.subr.mxu0 %v2817_v0 }
 0x136   :  { %2719 = vmatprep.subr.mxu1 %v2817_v0 }
 0x138   :  { %2701 = vmatpush3.xpose.msk.msra.mxu0 %vm43_vm0, %v3185_v57 }
 0x139   :  { %2720 = vmatpush3.xpose.msk.msra.mxu1 %vm43_vm0, %v3255_v4  ;;  %2702 = vmatprep.subr.mxu0 %v2817_v0 }
 0x13a   :  { %2721 = vmatprep.subr.mxu1 %v2817_v0 }
 0x13c   :  { %2703 = vmatpush3.xpose.msk.msra.mxu0 %vm43_vm0, %v3195_v58 }
 0x13d   :  { %2722 = vmatpush3.xpose.msk.msra.mxu1 %vm43_vm0, %v3267_v6  ;;  %2704 = vmatprep.subr.mxu0 %v2817_v0 }
 0x13e   :  { %2723 = vmatprep.subr.mxu1 %v2817_v0 }
 0x140   :  { %2705 = vmatpush3.xpose.msk.msra.mxu0 %vm43_vm0, %v3207_v59 }
 0x141   :  { %2724 = vmatpush3.xpose.msk.msra.mxu1 %vm43_vm0, %v3281_v8  ;;  %2706 = vmatprep.subr.mxu0 %v2817_v0 }
 0x142   :  { %2725 = vmatprep.subr.mxu1 %v2817_v0 }
 0x144   :  { %2707 = vmatpush3.xpose.msk.msra.mxu0 %vm43_vm0, %v3215_v60 }
 0x145   :  { %2726 = vmatpush3.xpose.msk.msra.mxu1 %vm43_vm0, %v3291_v10  ;;  %2708 = vmatprep.subr.mxu0 %v2817_v0  ;;  %v2045_v19 = vpop.permute.xlu0 %2044 }
 0x146   :  { %2727 = vmatprep.subr.mxu1 %v2817_v0 }
 0x148   :  { %2709 = vmatpush3.xpose.msk.msra.mxu0 %vm43_vm0, %v3223_v61 }
 0x149   :  { %2728 = vmatpush3.xpose.msk.msra.mxu1 %vm43_vm0, %v3301_v12  ;;  %2710 = vmatprep.subr.mxu0 %v2817_v0 }
 0x14a   :  { %2729 = vmatprep.subr.mxu1 %v2817_v0 }
 0x14c   :  { %2711 = vmatpush3.xpose.msk.msra.mxu0 %vm43_vm0, %v3231_v62 }
 0x14d   :  { %2730 = vmatpush3.xpose.msk.msra.mxu1 %vm43_vm0, %v3311_v14 }
 0x14f   :  { %v616_v40 = vpop.f32.mrf.mxu0  ;;  %2713 = vmatmul.mubr.msk.f32.vlgmr.msra.gmra.mxu0 %vm43_vm0, %v1835_v38 }
 0x150   :  { %2732 = vmatmul.mubr.msk.f32.vlgmr.msra.gmra.mxu1 %vm43_vm0, %v1942_v39  ;;  %v724_v41 = vpop.f32.mrf.mxu1  ;;  %v620_v47 = vadd.f32 %v616_v40, %v512_v37 }
 0x151   :  { %v2486_v42 = vpop.f32.mrf.mxu0 }
 0x152   :  { %v2505_v43 = vpop.f32.mrf.mxu1  ;;  %v728_v48 = vadd.f32 %v724_v41, %v620_v47 }
 0x16f   :  { %v833_v44 = vpop.f32.mrf.mxu0 }
 0x170   :  { %v941_v45 = vpop.f32.mrf.mxu1  ;;  %v837_v49 = vadd.f32 %v833_v44, %v728_v48 }
 0x171   :  { %v2524_v46 = vpop.f32.mrf.mxu0 }
 0x172   :  { %v2543_v0 = vpop.f32.mrf.mxu1  ;;  %v945_v50 = vadd.f32 %v941_v45, %v837_v49 }
 0x18f   :  { %v1049_v52 = vpop.f32.mrf.mxu0 }
 0x190   :  { %v1191_v53 = vpop.f32.mrf.mxu1  ;;  %v1053_v54 = vadd.f32 %v1049_v52, %v945_v50 }
 0x191   :  { %v2562_v55 = vpop.f32.mrf.mxu0 }
 0x192   :  { %v2581_v56 = vpop.f32.mrf.mxu1  ;;  %v1060_v57 = vadd.f32 %v1058_v51, %v1053_v54 }
 0x194   :  { %1062 = vst.msk [vmem:[#allocation8] sm:$0xf] %vm1061_vm4, %v1060_v57 }
 0x1af   :  { %v1288_v58 = vpop.f32.mrf.mxu0 }
 0x1b0   :  { %v1394_v59 = vpop.f32.mrf.mxu1  ;;  %v1289_v60 = vadd.f32 %v1288_v58, %v1191_v53 }
 0x1b1   :  { %v2600_v61 = vpop.f32.mrf.mxu0 }
 0x1b2   :  { %v2619_v62 = vpop.f32.mrf.mxu1  ;;  %v1398_v63 = vadd.f32 %v1394_v59, %v1289_v60 }
 0x1cf   :  { %v1501_v1 = vpop.f32.mrf.mxu0 }
 0x1d0   :  { %v1608_v2 = vpop.f32.mrf.mxu1  ;;  %v1505_v9 = vadd.f32 %v1501_v1, %v1398_v63 }
 0x1d1   :  { %v2638_v3 = vpop.f32.mrf.mxu0 }
 0x1d2   :  { %v2657_v4 = vpop.f32.mrf.mxu1  ;;  %v1612_v10 = vadd.f32 %v1608_v2, %v1505_v9 }
 0x1ef   :  { %v1715_v5 = vpop.f32.mrf.mxu0 }
 0x1f0   :  { %v1822_v6 = vpop.f32.mrf.mxu1  ;;  %v1719_v11 = vadd.f32 %v1715_v5, %v1612_v10 }
 0x1f1   :  { %v2676_v7 = vpop.f32.mrf.mxu0 }
 0x1f2   :  { %v2695_v8 = vpop.f32.mrf.mxu1  ;;  %v1826_v12 = vadd.f32 %v1822_v6, %v1719_v11 }
 0x20f   :  { %v1929_v13 = vpop.f32.mrf.mxu0 }
 0x210   :  { %v2036_v14 = vpop.f32.mrf.mxu1  ;;  %v1933_v15 = vadd.f32 %v1929_v13, %v1826_v12 }
 0x211   :  { %v2714_v16 = vpop.f32.mrf.mxu0 }
 0x212   :  { %v2733_v17 = vpop.f32.mrf.mxu1  ;;  %v2040_v18 = vadd.f32 %v2036_v14, %v1933_v15 }
 0x214   :  { %v2047_v20 = vadd.f32 %v2045_v19, %v2040_v18 }
 0x216   :  { %2049 = vst.msk [vmem:[#allocation8 + $0x4] sm:$0xf] %vm1061_vm4, %v2047_v20 }
 0x217   :  { %2796 = shalt.err (!%p2793_p0)
}
 0x218   :  { %2061 = dma.vmem_to_hbm [thread:$0]  %s2056_s28, 128, %s3505_s3, [#allocation5], %s2815_s22, %s2815_s22, %s2816_s23  }
 0x219   :  { %2809 = dma.done.wait [#allocation5], 128  }
 0x21a   :  { %2810 = vsyncadd [#allocation5], 4294967168 }
 0x21b   :  { %2065 = vsyncpa [#allocation4], 1 }
 0x21c   :  { %2066 = vsyncpa [#allocation7], 1 }
 0x21d   :  { %2067 = vsyncpa [#allocation5], 1 }

</bundles_post_ra>
